<compile_context>
chip_gen: v7x
topology: tpu7x:2x2x1
jax: 0.10.0
libtpu: 0.0.40
codegen_flags: <defaults>
</compile_context>

<pallas_src>
import jax
import jax.numpy as jnp
from jax.experimental import pallas as pl
from jax.experimental.pallas import tpu as pltpu


# ---------------------------------------------------------------------------
# Pallas kernel: whole sequence in one invocation.
# ---------------------------------------------------------------------------
def gru_fc_kernel(x_ref,                                   # (T*B, D) time-major, flattened
                  wih_r_ref, wih_z_ref, wih_n_ref,         # (D, H) each
                  whh_r_ref, whh_z_ref, whh_n_ref,         # (H, H) each
                  b_r_ref, b_z_ref, b_in_ref, b_hn_ref,    # (1, H) each
                  wfc_ref, bfc_ref,                        # (H, C), (1, C)
                  out_ref,                                 # (B, C)
                  gi_r_ref, gi_z_ref, gi_n_ref):           # VMEM scratch (T*B, H)
    B = out_ref.shape[0]
    H = whh_r_ref.shape[0]
    T = gi_r_ref.shape[0] // B

    x = x_ref[...]                                         # (T*B, D)

    # Batched input projection for all time steps at once (one MXU push per gate,
    # M = T*B), with r/z biases already folded and b_in added here.
    gi_r_ref[...] = (jnp.dot(x, wih_r_ref[...], preferred_element_type=jnp.float32)
                     + b_r_ref[...])
    gi_z_ref[...] = (jnp.dot(x, wih_z_ref[...], preferred_element_type=jnp.float32)
                     + b_z_ref[...])
    gi_n_ref[...] = (jnp.dot(x, wih_n_ref[...], preferred_element_type=jnp.float32)
                     + b_in_ref[...])

    whh_r = whh_r_ref[...]
    whh_z = whh_z_ref[...]
    whh_n = whh_n_ref[...]
    b_hn = b_hn_ref[...]

    # Sequential recurrence, fully unrolled (T is small & static). Only the tiny
    # (B,H)@(H,H) hidden matmuls + gate math remain on the serial critical path.
    h = jnp.zeros((B, H), jnp.float32)
    for t in range(T):
        lo = t * B                                          # static, sublane-aligned
        gi_r = gi_r_ref[lo:lo + B, :]
        gi_z = gi_z_ref[lo:lo + B, :]
        gi_n = gi_n_ref[lo:lo + B, :]

        r = jax.nn.sigmoid(
            gi_r + jnp.dot(h, whh_r, preferred_element_type=jnp.float32))
        z = jax.nn.sigmoid(
            gi_z + jnp.dot(h, whh_z, preferred_element_type=jnp.float32))
        n = jnp.tanh(
            gi_n + r * (jnp.dot(h, whh_n, preferred_element_type=jnp.float32) + b_hn))
        h = (1.0 - z) * n + z * h

    # fc head on the last hidden state: (B, H) @ (H, C) + (1, C)
    out_ref[...] = (jnp.dot(h, wfc_ref[...], preferred_element_type=jnp.float32)
                    + bfc_ref[...])


# ---------------------------------------------------------------------------
# Wrapper
# ---------------------------------------------------------------------------
def mrna_rnn_forward(x, params):
    """x: (B, T, D) float32 (PyTorch batch_first layout). Returns (B, 2) logits."""
    B, T, D = x.shape
    H = params["w_hh"].shape[1]          # hidden size
    C = params["w_fc"].shape[0]          # n_classes

    # Glue (plain JAX, outside the kernel): time-major flatten + per-gate weight
    # split + pre-transpose + bias folding.
    x_flat = jnp.transpose(x, (1, 0, 2)).reshape(T * B, D).astype(jnp.float32)

    w_ih = params["w_ih"].astype(jnp.float32)       # (3H, D)  rows: [r | z | n]
    w_hh = params["w_hh"].astype(jnp.float32)       # (3H, H)
    b_ih = params["b_ih"].astype(jnp.float32)       # (3H,)
    b_hh = params["b_hh"].astype(jnp.float32)       # (3H,)

    wih_r = w_ih[0:H].T                              # (D, H)
    wih_z = w_ih[H:2 * H].T
    wih_n = w_ih[2 * H:3 * H].T
    whh_r = w_hh[0:H].T                              # (H, H)
    whh_z = w_hh[H:2 * H].T
    whh_n = w_hh[2 * H:3 * H].T

    b_r = (b_ih[0:H] + b_hh[0:H]).reshape(1, H)             # folded
    b_z = (b_ih[H:2 * H] + b_hh[H:2 * H]).reshape(1, H)     # folded
    b_in = b_ih[2 * H:3 * H].reshape(1, H)                  # input-side n bias
    b_hn = b_hh[2 * H:3 * H].reshape(1, H)                  # must stay inside r*(...)

    wfc = params["w_fc"].astype(jnp.float32).T              # (H, C)
    bfc = params["b_fc"].astype(jnp.float32).reshape(1, C)  # (1, C)

    vmem = pl.BlockSpec(memory_space=pltpu.MemorySpace.VMEM)  # whole-array, VMEM-resident

    out = pl.pallas_call(
        gru_fc_kernel,
        out_shape=jax.ShapeDtypeStruct((B, C), jnp.float32),
        in_specs=[vmem] * 13,
        out_specs=vmem,
        scratch_shapes=[
            pltpu.VMEM((T * B, H), jnp.float32),   # gi_r
            pltpu.VMEM((T * B, H), jnp.float32),   # gi_z
            pltpu.VMEM((T * B, H), jnp.float32),   # gi_n
        ],
    )(x_flat, wih_r, wih_z, wih_n, whh_r, whh_z, whh_n,
      b_r, b_z, b_in, b_hn, wfc, bfc)
    return out


# ---------------------------------------------------------------------------
# Pure-JAX reference (for correctness check only)
# ---------------------------------------------------------------------------
def mrna_rnn_reference(x, params):
    B, T, D = x.shape
    H = params["w_hh"].shape[1]
    wih_t = params["w_ih"].T
    whh_t = params["w_hh"].T
    bih, bhh = params["b_ih"], params["b_hh"]

    def step(h, x_t):
        gi = x_t @ wih_t + bih
        gh = h @ whh_t + bhh
        i_r, i_z, i_n = gi[:, :H], gi[:, H:2 * H], gi[:, 2 * H:]
        h_r, h_z, h_n = gh[:, :H], gh[:, H:2 * H], gh[:, 2 * H:]
        r = jax.nn.sigmoid(i_r + h_r)
        z = jax.nn.sigmoid(i_z + h_z)
        n = jnp.tanh(i_n + r * h_n)
        h_new = (1.0 - z) * n + z * h
        return h_new, None

    h0 = jnp.zeros((B, H), jnp.float32)
    h_last, _ = jax.lax.scan(step, h0, jnp.transpose(x, (1, 0, 2)))
    return h_last @ params["w_fc"].T + params["b_fc"]


# ---------------------------------------------------------------------------
# Deterministic parameter init (PyTorch-style uniform(-1/sqrt(H), 1/sqrt(H)))
# ---------------------------------------------------------------------------
def init_params(key, input_size, hidden, n_classes):
    k = 1.0 / jnp.sqrt(jnp.float32(hidden))
    keys = jax.random.split(key, 6)
    u = lambda kk, shape: jax.random.uniform(kk, shape, jnp.float32, -k, k)
    return {
        "w_ih": u(keys[0], (3 * hidden, input_size)),
        "w_hh": u(keys[1], (3 * hidden, hidden)),
        "b_ih": u(keys[2], (3 * hidden,)),
        "b_hh": u(keys[3], (3 * hidden,)),
        "w_fc": u(keys[4], (n_classes, hidden)),
        "b_fc": u(keys[5], (n_classes,)),
    }


if __name__ == "__main__":
    B, T, D, H, C = 8, 10, 64, 32, 2   # mRNA_RNN defaults (seq_len=10, input=64, hidden=32)

    key = jax.random.PRNGKey(0)
    kx, kp = jax.random.split(key)
    x = jax.random.normal(kx, (B, T, D), jnp.float32)
    params = init_params(kp, D, H, C)

    out = mrna_rnn_forward(x, params)
    out = jax.block_until_ready(out)

    ref = mrna_rnn_reference(x, params)
    assert out.shape == (B, C)
    assert jnp.allclose(out, ref, atol=1e-3, rtol=1e-3), "Pallas GRU mismatch vs reference"

    print("KERNEL_OK")
</pallas_src>

<mosaic_0001>
module attributes {stable_mosaic.version = 11 : i64} {
  func.func @gru_fc_kernel(%arg0: memref<80x64xf32, #tpu.memory_space<vmem>>, %arg1: memref<64x32xf32, #tpu.memory_space<vmem>>, %arg2: memref<64x32xf32, #tpu.memory_space<vmem>>, %arg3: memref<64x32xf32, #tpu.memory_space<vmem>>, %arg4: memref<32x32xf32, #tpu.memory_space<vmem>>, %arg5: memref<32x32xf32, #tpu.memory_space<vmem>>, %arg6: memref<32x32xf32, #tpu.memory_space<vmem>>, %arg7: memref<1x32xf32, #tpu.memory_space<vmem>>, %arg8: memref<1x32xf32, #tpu.memory_space<vmem>>, %arg9: memref<1x32xf32, #tpu.memory_space<vmem>>, %arg10: memref<1x32xf32, #tpu.memory_space<vmem>>, %arg11: memref<32x2xf32, #tpu.memory_space<vmem>>, %arg12: memref<1x2xf32, #tpu.memory_space<vmem>>, %arg13: memref<8x2xf32, #tpu.memory_space<vmem>>, %arg14: memref<80x32xf32, #tpu.memory_space<vmem>>, %arg15: memref<80x32xf32, #tpu.memory_space<vmem>>, %arg16: memref<80x32xf32, #tpu.memory_space<vmem>>) attributes {dimension_semantics = [], scalar_prefetch = 0 : i64, scratch_operands = 3 : i64, tpu.core_type = #tpu.core_type<tc>} {
    %c0 = arith.constant 0 : index
    %c0_0 = arith.constant 0 : index
    %0 = vector.load %arg0[%c0, %c0_0] : memref<80x64xf32, #tpu.memory_space<vmem>>, vector<80x64xf32>
    %c0_1 = arith.constant 0 : index
    %c0_2 = arith.constant 0 : index
    %1 = vector.load %arg1[%c0_1, %c0_2] : memref<64x32xf32, #tpu.memory_space<vmem>>, vector<64x32xf32>
    %cst = arith.constant dense<0.000000e+00> : vector<80x32xf32>
    %2 = tpu.matmul %0, %1, %cst {dimension_numbers = #tpu.dot_dimension_numbers<[1], [0], [0], [1], [0, 0, 1, 1], [], []>} : vector<80x64xf32>, vector<64x32xf32>, vector<80x32xf32> -> vector<80x32xf32>
    %c0_3 = arith.constant 0 : index
    %c0_4 = arith.constant 0 : index
    %3 = vector.load %arg7[%c0_3, %c0_4] : memref<1x32xf32, #tpu.memory_space<vmem>>, vector<1x32xf32>
    %4 = vector.broadcast %3 : vector<1x32xf32> to vector<80x32xf32>
    %5 = arith.addf %2, %4 : vector<80x32xf32>
    %c0_5 = arith.constant 0 : index
    %c0_6 = arith.constant 0 : index
    %6 = vector.load %arg14[%c0_5, %c0_6] : memref<80x32xf32, #tpu.memory_space<vmem>>, vector<80x32xf32>
    tpu.vector_store %arg14[%c0_5, %c0_6], %5 {strides = array<i32>} : memref<80x32xf32, #tpu.memory_space<vmem>>, vector<80x32xf32>,
    %c0_7 = arith.constant 0 : index
    %c0_8 = arith.constant 0 : index
    %7 = vector.load %arg2[%c0_7, %c0_8] : memref<64x32xf32, #tpu.memory_space<vmem>>, vector<64x32xf32>
    %cst_9 = arith.constant dense<0.000000e+00> : vector<80x32xf32>
    %8 = tpu.matmul %0, %7, %cst_9 {dimension_numbers = #tpu.dot_dimension_numbers<[1], [0], [0], [1], [0, 0, 1, 1], [], []>} : vector<80x64xf32>, vector<64x32xf32>, vector<80x32xf32> -> vector<80x32xf32>
    %c0_10 = arith.constant 0 : index
    %c0_11 = arith.constant 0 : index
    %9 = vector.load %arg8[%c0_10, %c0_11] : memref<1x32xf32, #tpu.memory_space<vmem>>, vector<1x32xf32>
    %10 = vector.broadcast %9 : vector<1x32xf32> to vector<80x32xf32>
    %11 = arith.addf %8, %10 : vector<80x32xf32>
    %c0_12 = arith.constant 0 : index
    %c0_13 = arith.constant 0 : index
    %12 = vector.load %arg15[%c0_12, %c0_13] : memref<80x32xf32, #tpu.memory_space<vmem>>, vector<80x32xf32>
    tpu.vector_store %arg15[%c0_12, %c0_13], %11 {strides = array<i32>} : memref<80x32xf32, #tpu.memory_space<vmem>>, vector<80x32xf32>,
    %c0_14 = arith.constant 0 : index
    %c0_15 = arith.constant 0 : index
    %13 = vector.load %arg3[%c0_14, %c0_15] : memref<64x32xf32, #tpu.memory_space<vmem>>, vector<64x32xf32>
    %cst_16 = arith.constant dense<0.000000e+00> : vector<80x32xf32>
    %14 = tpu.matmul %0, %13, %cst_16 {dimension_numbers = #tpu.dot_dimension_numbers<[1], [0], [0], [1], [0, 0, 1, 1], [], []>} : vector<80x64xf32>, vector<64x32xf32>, vector<80x32xf32> -> vector<80x32xf32>
    %c0_17 = arith.constant 0 : index
    %c0_18 = arith.constant 0 : index
    %15 = vector.load %arg9[%c0_17, %c0_18] : memref<1x32xf32, #tpu.memory_space<vmem>>, vector<1x32xf32>
    %16 = vector.broadcast %15 : vector<1x32xf32> to vector<80x32xf32>
    %17 = arith.addf %14, %16 : vector<80x32xf32>
    %c0_19 = arith.constant 0 : index
    %c0_20 = arith.constant 0 : index
    %18 = vector.load %arg16[%c0_19, %c0_20] : memref<80x32xf32, #tpu.memory_space<vmem>>, vector<80x32xf32>
    tpu.vector_store %arg16[%c0_19, %c0_20], %17 {strides = array<i32>} : memref<80x32xf32, #tpu.memory_space<vmem>>, vector<80x32xf32>,
    %c0_21 = arith.constant 0 : index
    %c0_22 = arith.constant 0 : index
    %19 = vector.load %arg4[%c0_21, %c0_22] : memref<32x32xf32, #tpu.memory_space<vmem>>, vector<32x32xf32>
    %c0_23 = arith.constant 0 : index
    %c0_24 = arith.constant 0 : index
    %20 = vector.load %arg5[%c0_23, %c0_24] : memref<32x32xf32, #tpu.memory_space<vmem>>, vector<32x32xf32>
    %c0_25 = arith.constant 0 : index
    %c0_26 = arith.constant 0 : index
    %21 = vector.load %arg6[%c0_25, %c0_26] : memref<32x32xf32, #tpu.memory_space<vmem>>, vector<32x32xf32>
    %c0_27 = arith.constant 0 : index
    %c0_28 = arith.constant 0 : index
    %22 = vector.load %arg10[%c0_27, %c0_28] : memref<1x32xf32, #tpu.memory_space<vmem>>, vector<1x32xf32>
    %cst_29 = arith.constant 0.000000e+00 : f32
    %23 = vector.broadcast %cst_29 : f32 to vector<8x32xf32>
    %c0_30 = arith.constant 0 : index
    %c0_31 = arith.constant 0 : index
    %24 = vector.load %arg14[%c0_30, %c0_31] : memref<80x32xf32, #tpu.memory_space<vmem>>, vector<8x32xf32>
    %c0_32 = arith.constant 0 : index
    %c0_33 = arith.constant 0 : index
    %25 = vector.load %arg15[%c0_32, %c0_33] : memref<80x32xf32, #tpu.memory_space<vmem>>, vector<8x32xf32>
    %c0_34 = arith.constant 0 : index
    %c0_35 = arith.constant 0 : index
    %26 = vector.load %arg16[%c0_34, %c0_35] : memref<80x32xf32, #tpu.memory_space<vmem>>, vector<8x32xf32>
    %cst_36 = arith.constant dense<0.000000e+00> : vector<8x32xf32>
    %27 = tpu.matmul %23, %19, %cst_36 {dimension_numbers = #tpu.dot_dimension_numbers<[1], [0], [0], [1], [0, 0, 1, 1], [], []>} : vector<8x32xf32>, vector<32x32xf32>, vector<8x32xf32> -> vector<8x32xf32>
    %28 = arith.addf %24, %27 : vector<8x32xf32>
    %29 = arith.negf %28 : vector<8x32xf32>
    %30 = math.exp %29 : vector<8x32xf32>
    %cst_37 = arith.constant 1.000000e+00 : f32
    %31 = vector.broadcast %cst_37 : f32 to vector<8x32xf32>
    %32 = arith.addf %31, %30 : vector<8x32xf32>
    %33 = arith.divf %31, %32 : vector<8x32xf32>
    %cst_38 = arith.constant dense<0.000000e+00> : vector<8x32xf32>
    %34 = tpu.matmul %23, %20, %cst_38 {dimension_numbers = #tpu.dot_dimension_numbers<[1], [0], [0], [1], [0, 0, 1, 1], [], []>} : vector<8x32xf32>, vector<32x32xf32>, vector<8x32xf32> -> vector<8x32xf32>
    %35 = arith.addf %25, %34 : vector<8x32xf32>
    %36 = arith.negf %35 : vector<8x32xf32>
    %37 = math.exp %36 : vector<8x32xf32>
    %cst_39 = arith.constant 1.000000e+00 : f32
    %38 = vector.broadcast %cst_39 : f32 to vector<8x32xf32>
    %39 = arith.addf %38, %37 : vector<8x32xf32>
    %40 = arith.divf %38, %39 : vector<8x32xf32>
    %cst_40 = arith.constant dense<0.000000e+00> : vector<8x32xf32>
    %41 = tpu.matmul %23, %21, %cst_40 {dimension_numbers = #tpu.dot_dimension_numbers<[1], [0], [0], [1], [0, 0, 1, 1], [], []>} : vector<8x32xf32>, vector<32x32xf32>, vector<8x32xf32> -> vector<8x32xf32>
    %42 = vector.broadcast %22 : vector<1x32xf32> to vector<8x32xf32>
    %43 = arith.addf %41, %42 : vector<8x32xf32>
    %44 = arith.mulf %33, %43 : vector<8x32xf32>
    %45 = arith.addf %26, %44 : vector<8x32xf32>
    %46 = math.tanh %45 : vector<8x32xf32>
    %cst_41 = arith.constant 1.000000e+00 : f32
    %47 = vector.broadcast %cst_41 : f32 to vector<8x32xf32>
    %48 = arith.subf %47, %40 : vector<8x32xf32>
    %49 = arith.mulf %48, %46 : vector<8x32xf32>
    %50 = arith.mulf %40, %23 : vector<8x32xf32>
    %51 = arith.addf %49, %50 : vector<8x32xf32>
    %c8 = arith.constant 8 : index
    %c0_42 = arith.constant 0 : index
    %52 = vector.load %arg14[%c8, %c0_42] : memref<80x32xf32, #tpu.memory_space<vmem>>, vector<8x32xf32>
    %c8_43 = arith.constant 8 : index
    %c0_44 = arith.constant 0 : index
    %53 = vector.load %arg15[%c8_43, %c0_44] : memref<80x32xf32, #tpu.memory_space<vmem>>, vector<8x32xf32>
    %c8_45 = arith.constant 8 : index
    %c0_46 = arith.constant 0 : index
    %54 = vector.load %arg16[%c8_45, %c0_46] : memref<80x32xf32, #tpu.memory_space<vmem>>, vector<8x32xf32>
    %cst_47 = arith.constant dense<0.000000e+00> : vector<8x32xf32>
    %55 = tpu.matmul %51, %19, %cst_47 {dimension_numbers = #tpu.dot_dimension_numbers<[1], [0], [0], [1], [0, 0, 1, 1], [], []>} : vector<8x32xf32>, vector<32x32xf32>, vector<8x32xf32> -> vector<8x32xf32>
    %56 = arith.addf %52, %55 : vector<8x32xf32>
    %57 = arith.negf %56 : vector<8x32xf32>
    %58 = math.exp %57 : vector<8x32xf32>
    %cst_48 = arith.constant 1.000000e+00 : f32
    %59 = vector.broadcast %cst_48 : f32 to vector<8x32xf32>
    %60 = arith.addf %59, %58 : vector<8x32xf32>
    %61 = arith.divf %59, %60 : vector<8x32xf32>
    %cst_49 = arith.constant dense<0.000000e+00> : vector<8x32xf32>
    %62 = tpu.matmul %51, %20, %cst_49 {dimension_numbers = #tpu.dot_dimension_numbers<[1], [0], [0], [1], [0, 0, 1, 1], [], []>} : vector<8x32xf32>, vector<32x32xf32>, vector<8x32xf32> -> vector<8x32xf32>
    %63 = arith.addf %53, %62 : vector<8x32xf32>
    %64 = arith.negf %63 : vector<8x32xf32>
    %65 = math.exp %64 : vector<8x32xf32>
    %cst_50 = arith.constant 1.000000e+00 : f32
    %66 = vector.broadcast %cst_50 : f32 to vector<8x32xf32>
    %67 = arith.addf %66, %65 : vector<8x32xf32>
    %68 = arith.divf %66, %67 : vector<8x32xf32>
    %cst_51 = arith.constant dense<0.000000e+00> : vector<8x32xf32>
    %69 = tpu.matmul %51, %21, %cst_51 {dimension_numbers = #tpu.dot_dimension_numbers<[1], [0], [0], [1], [0, 0, 1, 1], [], []>} : vector<8x32xf32>, vector<32x32xf32>, vector<8x32xf32> -> vector<8x32xf32>
    %70 = vector.broadcast %22 : vector<1x32xf32> to vector<8x32xf32>
    %71 = arith.addf %69, %70 : vector<8x32xf32>
    %72 = arith.mulf %61, %71 : vector<8x32xf32>
    %73 = arith.addf %54, %72 : vector<8x32xf32>
    %74 = math.tanh %73 : vector<8x32xf32>
    %cst_52 = arith.constant 1.000000e+00 : f32
    %75 = vector.broadcast %cst_52 : f32 to vector<8x32xf32>
    %76 = arith.subf %75, %68 : vector<8x32xf32>
    %77 = arith.mulf %76, %74 : vector<8x32xf32>
    %78 = arith.mulf %68, %51 : vector<8x32xf32>
    %79 = arith.addf %77, %78 : vector<8x32xf32>
    %c16 = arith.constant 16 : index
    %c0_53 = arith.constant 0 : index
    %80 = vector.load %arg14[%c16, %c0_53] : memref<80x32xf32, #tpu.memory_space<vmem>>, vector<8x32xf32>
    %c16_54 = arith.constant 16 : index
    %c0_55 = arith.constant 0 : index
    %81 = vector.load %arg15[%c16_54, %c0_55] : memref<80x32xf32, #tpu.memory_space<vmem>>, vector<8x32xf32>
    %c16_56 = arith.constant 16 : index
    %c0_57 = arith.constant 0 : index
    %82 = vector.load %arg16[%c16_56, %c0_57] : memref<80x32xf32, #tpu.memory_space<vmem>>, vector<8x32xf32>
    %cst_58 = arith.constant dense<0.000000e+00> : vector<8x32xf32>
    %83 = tpu.matmul %79, %19, %cst_58 {dimension_numbers = #tpu.dot_dimension_numbers<[1], [0], [0], [1], [0, 0, 1, 1], [], []>} : vector<8x32xf32>, vector<32x32xf32>, vector<8x32xf32> -> vector<8x32xf32>
    %84 = arith.addf %80, %83 : vector<8x32xf32>
    %85 = arith.negf %84 : vector<8x32xf32>
    %86 = math.exp %85 : vector<8x32xf32>
    %cst_59 = arith.constant 1.000000e+00 : f32
    %87 = vector.broadcast %cst_59 : f32 to vector<8x32xf32>
    %88 = arith.addf %87, %86 : vector<8x32xf32>
    %89 = arith.divf %87, %88 : vector<8x32xf32>
    %cst_60 = arith.constant dense<0.000000e+00> : vector<8x32xf32>
    %90 = tpu.matmul %79, %20, %cst_60 {dimension_numbers = #tpu.dot_dimension_numbers<[1], [0], [0], [1], [0, 0, 1, 1], [], []>} : vector<8x32xf32>, vector<32x32xf32>, vector<8x32xf32> -> vector<8x32xf32>
    %91 = arith.addf %81, %90 : vector<8x32xf32>
    %92 = arith.negf %91 : vector<8x32xf32>
    %93 = math.exp %92 : vector<8x32xf32>
    %cst_61 = arith.constant 1.000000e+00 : f32
    %94 = vector.broadcast %cst_61 : f32 to vector<8x32xf32>
    %95 = arith.addf %94, %93 : vector<8x32xf32>
    %96 = arith.divf %94, %95 : vector<8x32xf32>
    %cst_62 = arith.constant dense<0.000000e+00> : vector<8x32xf32>
    %97 = tpu.matmul %79, %21, %cst_62 {dimension_numbers = #tpu.dot_dimension_numbers<[1], [0], [0], [1], [0, 0, 1, 1], [], []>} : vector<8x32xf32>, vector<32x32xf32>, vector<8x32xf32> -> vector<8x32xf32>
    %98 = vector.broadcast %22 : vector<1x32xf32> to vector<8x32xf32>
    %99 = arith.addf %97, %98 : vector<8x32xf32>
    %100 = arith.mulf %89, %99 : vector<8x32xf32>
    %101 = arith.addf %82, %100 : vector<8x32xf32>
    %102 = math.tanh %101 : vector<8x32xf32>
    %cst_63 = arith.constant 1.000000e+00 : f32
    %103 = vector.broadcast %cst_63 : f32 to vector<8x32xf32>
    %104 = arith.subf %103, %96 : vector<8x32xf32>
    %105 = arith.mulf %104, %102 : vector<8x32xf32>
    %106 = arith.mulf %96, %79 : vector<8x32xf32>
    %107 = arith.addf %105, %106 : vector<8x32xf32>
    %c24 = arith.constant 24 : index
    %c0_64 = arith.constant 0 : index
    %108 = vector.load %arg14[%c24, %c0_64] : memref<80x32xf32, #tpu.memory_space<vmem>>, vector<8x32xf32>
    %c24_65 = arith.constant 24 : index
    %c0_66 = arith.constant 0 : index
    %109 = vector.load %arg15[%c24_65, %c0_66] : memref<80x32xf32, #tpu.memory_space<vmem>>, vector<8x32xf32>
    %c24_67 = arith.constant 24 : index
    %c0_68 = arith.constant 0 : index
    %110 = vector.load %arg16[%c24_67, %c0_68] : memref<80x32xf32, #tpu.memory_space<vmem>>, vector<8x32xf32>
    %cst_69 = arith.constant dense<0.000000e+00> : vector<8x32xf32>
    %111 = tpu.matmul %107, %19, %cst_69 {dimension_numbers = #tpu.dot_dimension_numbers<[1], [0], [0], [1], [0, 0, 1, 1], [], []>} : vector<8x32xf32>, vector<32x32xf32>, vector<8x32xf32> -> vector<8x32xf32>
    %112 = arith.addf %108, %111 : vector<8x32xf32>
    %113 = arith.negf %112 : vector<8x32xf32>
    %114 = math.exp %113 : vector<8x32xf32>
    %cst_70 = arith.constant 1.000000e+00 : f32
    %115 = vector.broadcast %cst_70 : f32 to vector<8x32xf32>
    %116 = arith.addf %115, %114 : vector<8x32xf32>
    %117 = arith.divf %115, %116 : vector<8x32xf32>
    %cst_71 = arith.constant dense<0.000000e+00> : vector<8x32xf32>
    %118 = tpu.matmul %107, %20, %cst_71 {dimension_numbers = #tpu.dot_dimension_numbers<[1], [0], [0], [1], [0, 0, 1, 1], [], []>} : vector<8x32xf32>, vector<32x32xf32>, vector<8x32xf32> -> vector<8x32xf32>
    %119 = arith.addf %109, %118 : vector<8x32xf32>
    %120 = arith.negf %119 : vector<8x32xf32>
    %121 = math.exp %120 : vector<8x32xf32>
    %cst_72 = arith.constant 1.000000e+00 : f32
    %122 = vector.broadcast %cst_72 : f32 to vector<8x32xf32>
    %123 = arith.addf %122, %121 : vector<8x32xf32>
    %124 = arith.divf %122, %123 : vector<8x32xf32>
    %cst_73 = arith.constant dense<0.000000e+00> : vector<8x32xf32>
    %125 = tpu.matmul %107, %21, %cst_73 {dimension_numbers = #tpu.dot_dimension_numbers<[1], [0], [0], [1], [0, 0, 1, 1], [], []>} : vector<8x32xf32>, vector<32x32xf32>, vector<8x32xf32> -> vector<8x32xf32>
    %126 = vector.broadcast %22 : vector<1x32xf32> to vector<8x32xf32>
    %127 = arith.addf %125, %126 : vector<8x32xf32>
    %128 = arith.mulf %117, %127 : vector<8x32xf32>
    %129 = arith.addf %110, %128 : vector<8x32xf32>
    %130 = math.tanh %129 : vector<8x32xf32>
    %cst_74 = arith.constant 1.000000e+00 : f32
    %131 = vector.broadcast %cst_74 : f32 to vector<8x32xf32>
    %132 = arith.subf %131, %124 : vector<8x32xf32>
    %133 = arith.mulf %132, %130 : vector<8x32xf32>
    %134 = arith.mulf %124, %107 : vector<8x32xf32>
    %135 = arith.addf %133, %134 : vector<8x32xf32>
    %c32 = arith.constant 32 : index
    %c0_75 = arith.constant 0 : index
    %136 = vector.load %arg14[%c32, %c0_75] : memref<80x32xf32, #tpu.memory_space<vmem>>, vector<8x32xf32>
    %c32_76 = arith.constant 32 : index
    %c0_77 = arith.constant 0 : index
    %137 = vector.load %arg15[%c32_76, %c0_77] : memref<80x32xf32, #tpu.memory_space<vmem>>, vector<8x32xf32>
    %c32_78 = arith.constant 32 : index
    %c0_79 = arith.constant 0 : index
    %138 = vector.load %arg16[%c32_78, %c0_79] : memref<80x32xf32, #tpu.memory_space<vmem>>, vector<8x32xf32>
    %cst_80 = arith.constant dense<0.000000e+00> : vector<8x32xf32>
    %139 = tpu.matmul %135, %19, %cst_80 {dimension_numbers = #tpu.dot_dimension_numbers<[1], [0], [0], [1], [0, 0, 1, 1], [], []>} : vector<8x32xf32>, vector<32x32xf32>, vector<8x32xf32> -> vector<8x32xf32>
    %140 = arith.addf %136, %139 : vector<8x32xf32>
    %141 = arith.negf %140 : vector<8x32xf32>
    %142 = math.exp %141 : vector<8x32xf32>
    %cst_81 = arith.constant 1.000000e+00 : f32
    %143 = vector.broadcast %cst_81 : f32 to vector<8x32xf32>
    %144 = arith.addf %143, %142 : vector<8x32xf32>
    %145 = arith.divf %143, %144 : vector<8x32xf32>
    %cst_82 = arith.constant dense<0.000000e+00> : vector<8x32xf32>
    %146 = tpu.matmul %135, %20, %cst_82 {dimension_numbers = #tpu.dot_dimension_numbers<[1], [0], [0], [1], [0, 0, 1, 1], [], []>} : vector<8x32xf32>, vector<32x32xf32>, vector<8x32xf32> -> vector<8x32xf32>
    %147 = arith.addf %137, %146 : vector<8x32xf32>
    %148 = arith.negf %147 : vector<8x32xf32>
    %149 = math.exp %148 : vector<8x32xf32>
    %cst_83 = arith.constant 1.000000e+00 : f32
    %150 = vector.broadcast %cst_83 : f32 to vector<8x32xf32>
    %151 = arith.addf %150, %149 : vector<8x32xf32>
    %152 = arith.divf %150, %151 : vector<8x32xf32>
    %cst_84 = arith.constant dense<0.000000e+00> : vector<8x32xf32>
    %153 = tpu.matmul %135, %21, %cst_84 {dimension_numbers = #tpu.dot_dimension_numbers<[1], [0], [0], [1], [0, 0, 1, 1], [], []>} : vector<8x32xf32>, vector<32x32xf32>, vector<8x32xf32> -> vector<8x32xf32>
    %154 = vector.broadcast %22 : vector<1x32xf32> to vector<8x32xf32>
    %155 = arith.addf %153, %154 : vector<8x32xf32>
    %156 = arith.mulf %145, %155 : vector<8x32xf32>
    %157 = arith.addf %138, %156 : vector<8x32xf32>
    %158 = math.tanh %157 : vector<8x32xf32>
    %cst_85 = arith.constant 1.000000e+00 : f32
    %159 = vector.broadcast %cst_85 : f32 to vector<8x32xf32>
    %160 = arith.subf %159, %152 : vector<8x32xf32>
    %161 = arith.mulf %160, %158 : vector<8x32xf32>
    %162 = arith.mulf %152, %135 : vector<8x32xf32>
    %163 = arith.addf %161, %162 : vector<8x32xf32>
    %c40 = arith.constant 40 : index
    %c0_86 = arith.constant 0 : index
    %164 = vector.load %arg14[%c40, %c0_86] : memref<80x32xf32, #tpu.memory_space<vmem>>, vector<8x32xf32>
    %c40_87 = arith.constant 40 : index
    %c0_88 = arith.constant 0 : index
    %165 = vector.load %arg15[%c40_87, %c0_88] : memref<80x32xf32, #tpu.memory_space<vmem>>, vector<8x32xf32>
    %c40_89 = arith.constant 40 : index
    %c0_90 = arith.constant 0 : index
    %166 = vector.load %arg16[%c40_89, %c0_90] : memref<80x32xf32, #tpu.memory_space<vmem>>, vector<8x32xf32>
    %cst_91 = arith.constant dense<0.000000e+00> : vector<8x32xf32>
    %167 = tpu.matmul %163, %19, %cst_91 {dimension_numbers = #tpu.dot_dimension_numbers<[1], [0], [0], [1], [0, 0, 1, 1], [], []>} : vector<8x32xf32>, vector<32x32xf32>, vector<8x32xf32> -> vector<8x32xf32>
    %168 = arith.addf %164, %167 : vector<8x32xf32>
    %169 = arith.negf %168 : vector<8x32xf32>
    %170 = math.exp %169 : vector<8x32xf32>
    %cst_92 = arith.constant 1.000000e+00 : f32
    %171 = vector.broadcast %cst_92 : f32 to vector<8x32xf32>
    %172 = arith.addf %171, %170 : vector<8x32xf32>
    %173 = arith.divf %171, %172 : vector<8x32xf32>
    %cst_93 = arith.constant dense<0.000000e+00> : vector<8x32xf32>
    %174 = tpu.matmul %163, %20, %cst_93 {dimension_numbers = #tpu.dot_dimension_numbers<[1], [0], [0], [1], [0, 0, 1, 1], [], []>} : vector<8x32xf32>, vector<32x32xf32>, vector<8x32xf32> -> vector<8x32xf32>
    %175 = arith.addf %165, %174 : vector<8x32xf32>
    %176 = arith.negf %175 : vector<8x32xf32>
    %177 = math.exp %176 : vector<8x32xf32>
    %cst_94 = arith.constant 1.000000e+00 : f32
    %178 = vector.broadcast %cst_94 : f32 to vector<8x32xf32>
    %179 = arith.addf %178, %177 : vector<8x32xf32>
    %180 = arith.divf %178, %179 : vector<8x32xf32>
    %cst_95 = arith.constant dense<0.000000e+00> : vector<8x32xf32>
    %181 = tpu.matmul %163, %21, %cst_95 {dimension_numbers = #tpu.dot_dimension_numbers<[1], [0], [0], [1], [0, 0, 1, 1], [], []>} : vector<8x32xf32>, vector<32x32xf32>, vector<8x32xf32> -> vector<8x32xf32>
    %182 = vector.broadcast %22 : vector<1x32xf32> to vector<8x32xf32>
    %183 = arith.addf %181, %182 : vector<8x32xf32>
    %184 = arith.mulf %173, %183 : vector<8x32xf32>
    %185 = arith.addf %166, %184 : vector<8x32xf32>
    %186 = math.tanh %185 : vector<8x32xf32>
    %cst_96 = arith.constant 1.000000e+00 : f32
    %187 = vector.broadcast %cst_96 : f32 to vector<8x32xf32>
    %188 = arith.subf %187, %180 : vector<8x32xf32>
    %189 = arith.mulf %188, %186 : vector<8x32xf32>
    %190 = arith.mulf %180, %163 : vector<8x32xf32>
    %191 = arith.addf %189, %190 : vector<8x32xf32>
    %c48 = arith.constant 48 : index
    %c0_97 = arith.constant 0 : index
    %192 = vector.load %arg14[%c48, %c0_97] : memref<80x32xf32, #tpu.memory_space<vmem>>, vector<8x32xf32>
    %c48_98 = arith.constant 48 : index
    %c0_99 = arith.constant 0 : index
    %193 = vector.load %arg15[%c48_98, %c0_99] : memref<80x32xf32, #tpu.memory_space<vmem>>, vector<8x32xf32>
    %c48_100 = arith.constant 48 : index
    %c0_101 = arith.constant 0 : index
    %194 = vector.load %arg16[%c48_100, %c0_101] : memref<80x32xf32, #tpu.memory_space<vmem>>, vector<8x32xf32>
    %cst_102 = arith.constant dense<0.000000e+00> : vector<8x32xf32>
    %195 = tpu.matmul %191, %19, %cst_102 {dimension_numbers = #tpu.dot_dimension_numbers<[1], [0], [0], [1], [0, 0, 1, 1], [], []>} : vector<8x32xf32>, vector<32x32xf32>, vector<8x32xf32> -> vector<8x32xf32>
    %196 = arith.addf %192, %195 : vector<8x32xf32>
    %197 = arith.negf %196 : vector<8x32xf32>
    %198 = math.exp %197 : vector<8x32xf32>
    %cst_103 = arith.constant 1.000000e+00 : f32
    %199 = vector.broadcast %cst_103 : f32 to vector<8x32xf32>
    %200 = arith.addf %199, %198 : vector<8x32xf32>
    %201 = arith.divf %199, %200 : vector<8x32xf32>
    %cst_104 = arith.constant dense<0.000000e+00> : vector<8x32xf32>
    %202 = tpu.matmul %191, %20, %cst_104 {dimension_numbers = #tpu.dot_dimension_numbers<[1], [0], [0], [1], [0, 0, 1, 1], [], []>} : vector<8x32xf32>, vector<32x32xf32>, vector<8x32xf32> -> vector<8x32xf32>
    %203 = arith.addf %193, %202 : vector<8x32xf32>
    %204 = arith.negf %203 : vector<8x32xf32>
    %205 = math.exp %204 : vector<8x32xf32>
    %cst_105 = arith.constant 1.000000e+00 : f32
    %206 = vector.broadcast %cst_105 : f32 to vector<8x32xf32>
    %207 = arith.addf %206, %205 : vector<8x32xf32>
    %208 = arith.divf %206, %207 : vector<8x32xf32>
    %cst_106 = arith.constant dense<0.000000e+00> : vector<8x32xf32>
    %209 = tpu.matmul %191, %21, %cst_106 {dimension_numbers = #tpu.dot_dimension_numbers<[1], [0], [0], [1], [0, 0, 1, 1], [], []>} : vector<8x32xf32>, vector<32x32xf32>, vector<8x32xf32> -> vector<8x32xf32>
    %210 = vector.broadcast %22 : vector<1x32xf32> to vector<8x32xf32>
    %211 = arith.addf %209, %210 : vector<8x32xf32>
    %212 = arith.mulf %201, %211 : vector<8x32xf32>
    %213 = arith.addf %194, %212 : vector<8x32xf32>
    %214 = math.tanh %213 : vector<8x32xf32>
    %cst_107 = arith.constant 1.000000e+00 : f32
    %215 = vector.broadcast %cst_107 : f32 to vector<8x32xf32>
    %216 = arith.subf %215, %208 : vector<8x32xf32>
    %217 = arith.mulf %216, %214 : vector<8x32xf32>
    %218 = arith.mulf %208, %191 : vector<8x32xf32>
    %219 = arith.addf %217, %218 : vector<8x32xf32>
    %c56 = arith.constant 56 : index
    %c0_108 = arith.constant 0 : index
    %220 = vector.load %arg14[%c56, %c0_108] : memref<80x32xf32, #tpu.memory_space<vmem>>, vector<8x32xf32>
    %c56_109 = arith.constant 56 : index
    %c0_110 = arith.constant 0 : index
    %221 = vector.load %arg15[%c56_109, %c0_110] : memref<80x32xf32, #tpu.memory_space<vmem>>, vector<8x32xf32>
    %c56_111 = arith.constant 56 : index
    %c0_112 = arith.constant 0 : index
    %222 = vector.load %arg16[%c56_111, %c0_112] : memref<80x32xf32, #tpu.memory_space<vmem>>, vector<8x32xf32>
    %cst_113 = arith.constant dense<0.000000e+00> : vector<8x32xf32>
    %223 = tpu.matmul %219, %19, %cst_113 {dimension_numbers = #tpu.dot_dimension_numbers<[1], [0], [0], [1], [0, 0, 1, 1], [], []>} : vector<8x32xf32>, vector<32x32xf32>, vector<8x32xf32> -> vector<8x32xf32>
    %224 = arith.addf %220, %223 : vector<8x32xf32>
    %225 = arith.negf %224 : vector<8x32xf32>
    %226 = math.exp %225 : vector<8x32xf32>
    %cst_114 = arith.constant 1.000000e+00 : f32
    %227 = vector.broadcast %cst_114 : f32 to vector<8x32xf32>
    %228 = arith.addf %227, %226 : vector<8x32xf32>
    %229 = arith.divf %227, %228 : vector<8x32xf32>
    %cst_115 = arith.constant dense<0.000000e+00> : vector<8x32xf32>
    %230 = tpu.matmul %219, %20, %cst_115 {dimension_numbers = #tpu.dot_dimension_numbers<[1], [0], [0], [1], [0, 0, 1, 1], [], []>} : vector<8x32xf32>, vector<32x32xf32>, vector<8x32xf32> -> vector<8x32xf32>
    %231 = arith.addf %221, %230 : vector<8x32xf32>
    %232 = arith.negf %231 : vector<8x32xf32>
    %233 = math.exp %232 : vector<8x32xf32>
    %cst_116 = arith.constant 1.000000e+00 : f32
    %234 = vector.broadcast %cst_116 : f32 to vector<8x32xf32>
    %235 = arith.addf %234, %233 : vector<8x32xf32>
    %236 = arith.divf %234, %235 : vector<8x32xf32>
    %cst_117 = arith.constant dense<0.000000e+00> : vector<8x32xf32>
    %237 = tpu.matmul %219, %21, %cst_117 {dimension_numbers = #tpu.dot_dimension_numbers<[1], [0], [0], [1], [0, 0, 1, 1], [], []>} : vector<8x32xf32>, vector<32x32xf32>, vector<8x32xf32> -> vector<8x32xf32>
    %238 = vector.broadcast %22 : vector<1x32xf32> to vector<8x32xf32>
    %239 = arith.addf %237, %238 : vector<8x32xf32>
    %240 = arith.mulf %229, %239 : vector<8x32xf32>
    %241 = arith.addf %222, %240 : vector<8x32xf32>
    %242 = math.tanh %241 : vector<8x32xf32>
    %cst_118 = arith.constant 1.000000e+00 : f32
    %243 = vector.broadcast %cst_118 : f32 to vector<8x32xf32>
    %244 = arith.subf %243, %236 : vector<8x32xf32>
    %245 = arith.mulf %244, %242 : vector<8x32xf32>
    %246 = arith.mulf %236, %219 : vector<8x32xf32>
    %247 = arith.addf %245, %246 : vector<8x32xf32>
    %c64 = arith.constant 64 : index
    %c0_119 = arith.constant 0 : index
    %248 = vector.load %arg14[%c64, %c0_119] : memref<80x32xf32, #tpu.memory_space<vmem>>, vector<8x32xf32>
    %c64_120 = arith.constant 64 : index
    %c0_121 = arith.constant 0 : index
    %249 = vector.load %arg15[%c64_120, %c0_121] : memref<80x32xf32, #tpu.memory_space<vmem>>, vector<8x32xf32>
    %c64_122 = arith.constant 64 : index
    %c0_123 = arith.constant 0 : index
    %250 = vector.load %arg16[%c64_122, %c0_123] : memref<80x32xf32, #tpu.memory_space<vmem>>, vector<8x32xf32>
    %cst_124 = arith.constant dense<0.000000e+00> : vector<8x32xf32>
    %251 = tpu.matmul %247, %19, %cst_124 {dimension_numbers = #tpu.dot_dimension_numbers<[1], [0], [0], [1], [0, 0, 1, 1], [], []>} : vector<8x32xf32>, vector<32x32xf32>, vector<8x32xf32> -> vector<8x32xf32>
    %252 = arith.addf %248, %251 : vector<8x32xf32>
    %253 = arith.negf %252 : vector<8x32xf32>
    %254 = math.exp %253 : vector<8x32xf32>
    %cst_125 = arith.constant 1.000000e+00 : f32
    %255 = vector.broadcast %cst_125 : f32 to vector<8x32xf32>
    %256 = arith.addf %255, %254 : vector<8x32xf32>
    %257 = arith.divf %255, %256 : vector<8x32xf32>
    %cst_126 = arith.constant dense<0.000000e+00> : vector<8x32xf32>
    %258 = tpu.matmul %247, %20, %cst_126 {dimension_numbers = #tpu.dot_dimension_numbers<[1], [0], [0], [1], [0, 0, 1, 1], [], []>} : vector<8x32xf32>, vector<32x32xf32>, vector<8x32xf32> -> vector<8x32xf32>
    %259 = arith.addf %249, %258 : vector<8x32xf32>
    %260 = arith.negf %259 : vector<8x32xf32>
    %261 = math.exp %260 : vector<8x32xf32>
    %cst_127 = arith.constant 1.000000e+00 : f32
    %262 = vector.broadcast %cst_127 : f32 to vector<8x32xf32>
    %263 = arith.addf %262, %261 : vector<8x32xf32>
    %264 = arith.divf %262, %263 : vector<8x32xf32>
    %cst_128 = arith.constant dense<0.000000e+00> : vector<8x32xf32>
    %265 = tpu.matmul %247, %21, %cst_128 {dimension_numbers = #tpu.dot_dimension_numbers<[1], [0], [0], [1], [0, 0, 1, 1], [], []>} : vector<8x32xf32>, vector<32x32xf32>, vector<8x32xf32> -> vector<8x32xf32>
    %266 = vector.broadcast %22 : vector<1x32xf32> to vector<8x32xf32>
    %267 = arith.addf %265, %266 : vector<8x32xf32>
    %268 = arith.mulf %257, %267 : vector<8x32xf32>
    %269 = arith.addf %250, %268 : vector<8x32xf32>
    %270 = math.tanh %269 : vector<8x32xf32>
    %cst_129 = arith.constant 1.000000e+00 : f32
    %271 = vector.broadcast %cst_129 : f32 to vector<8x32xf32>
    %272 = arith.subf %271, %264 : vector<8x32xf32>
    %273 = arith.mulf %272, %270 : vector<8x32xf32>
    %274 = arith.mulf %264, %247 : vector<8x32xf32>
    %275 = arith.addf %273, %274 : vector<8x32xf32>
    %c72 = arith.constant 72 : index
    %c0_130 = arith.constant 0 : index
    %276 = vector.load %arg14[%c72, %c0_130] : memref<80x32xf32, #tpu.memory_space<vmem>>, vector<8x32xf32>
    %c72_131 = arith.constant 72 : index
    %c0_132 = arith.constant 0 : index
    %277 = vector.load %arg15[%c72_131, %c0_132] : memref<80x32xf32, #tpu.memory_space<vmem>>, vector<8x32xf32>
    %c72_133 = arith.constant 72 : index
    %c0_134 = arith.constant 0 : index
    %278 = vector.load %arg16[%c72_133, %c0_134] : memref<80x32xf32, #tpu.memory_space<vmem>>, vector<8x32xf32>
    %cst_135 = arith.constant dense<0.000000e+00> : vector<8x32xf32>
    %279 = tpu.matmul %275, %19, %cst_135 {dimension_numbers = #tpu.dot_dimension_numbers<[1], [0], [0], [1], [0, 0, 1, 1], [], []>} : vector<8x32xf32>, vector<32x32xf32>, vector<8x32xf32> -> vector<8x32xf32>
    %280 = arith.addf %276, %279 : vector<8x32xf32>
    %281 = arith.negf %280 : vector<8x32xf32>
    %282 = math.exp %281 : vector<8x32xf32>
    %cst_136 = arith.constant 1.000000e+00 : f32
    %283 = vector.broadcast %cst_136 : f32 to vector<8x32xf32>
    %284 = arith.addf %283, %282 : vector<8x32xf32>
    %285 = arith.divf %283, %284 : vector<8x32xf32>
    %cst_137 = arith.constant dense<0.000000e+00> : vector<8x32xf32>
    %286 = tpu.matmul %275, %20, %cst_137 {dimension_numbers = #tpu.dot_dimension_numbers<[1], [0], [0], [1], [0, 0, 1, 1], [], []>} : vector<8x32xf32>, vector<32x32xf32>, vector<8x32xf32> -> vector<8x32xf32>
    %287 = arith.addf %277, %286 : vector<8x32xf32>
    %288 = arith.negf %287 : vector<8x32xf32>
    %289 = math.exp %288 : vector<8x32xf32>
    %cst_138 = arith.constant 1.000000e+00 : f32
    %290 = vector.broadcast %cst_138 : f32 to vector<8x32xf32>
    %291 = arith.addf %290, %289 : vector<8x32xf32>
    %292 = arith.divf %290, %291 : vector<8x32xf32>
    %cst_139 = arith.constant dense<0.000000e+00> : vector<8x32xf32>
    %293 = tpu.matmul %275, %21, %cst_139 {dimension_numbers = #tpu.dot_dimension_numbers<[1], [0], [0], [1], [0, 0, 1, 1], [], []>} : vector<8x32xf32>, vector<32x32xf32>, vector<8x32xf32> -> vector<8x32xf32>
    %294 = vector.broadcast %22 : vector<1x32xf32> to vector<8x32xf32>
    %295 = arith.addf %293, %294 : vector<8x32xf32>
    %296 = arith.mulf %285, %295 : vector<8x32xf32>
    %297 = arith.addf %278, %296 : vector<8x32xf32>
    %298 = math.tanh %297 : vector<8x32xf32>
    %cst_140 = arith.constant 1.000000e+00 : f32
    %299 = vector.broadcast %cst_140 : f32 to vector<8x32xf32>
    %300 = arith.subf %299, %292 : vector<8x32xf32>
    %301 = arith.mulf %300, %298 : vector<8x32xf32>
    %302 = arith.mulf %292, %275 : vector<8x32xf32>
    %303 = arith.addf %301, %302 : vector<8x32xf32>
    %c0_141 = arith.constant 0 : index
    %c0_142 = arith.constant 0 : index
    %304 = vector.load %arg11[%c0_141, %c0_142] : memref<32x2xf32, #tpu.memory_space<vmem>>, vector<32x2xf32>
    %cst_143 = arith.constant dense<0.000000e+00> : vector<8x2xf32>
    %305 = tpu.matmul %303, %304, %cst_143 {dimension_numbers = #tpu.dot_dimension_numbers<[1], [0], [0], [1], [0, 0, 1, 1], [], []>} : vector<8x32xf32>, vector<32x2xf32>, vector<8x2xf32> -> vector<8x2xf32>
    %c0_144 = arith.constant 0 : index
    %c0_145 = arith.constant 0 : index
    %306 = vector.load %arg12[%c0_144, %c0_145] : memref<1x2xf32, #tpu.memory_space<vmem>>, vector<1x2xf32>
    %307 = vector.broadcast %306 : vector<1x2xf32> to vector<8x2xf32>
    %308 = arith.addf %305, %307 : vector<8x2xf32>
    %c0_146 = arith.constant 0 : index
    %c0_147 = arith.constant 0 : index
    %309 = vector.load %arg13[%c0_146, %c0_147] : memref<8x2xf32, #tpu.memory_space<vmem>>, vector<8x2xf32>
    tpu.vector_store %arg13[%c0_146, %c0_147], %308 {strides = array<i32>} : memref<8x2xf32, #tpu.memory_space<vmem>>, vector<8x2xf32>,
    return
  }
}

</mosaic_0001>

<bundles_post_ra>
// kernel: tpu_custom_call.1
= control target key start
LH: loop header
LB: loop body
LE: loop exit
PB: predicated region body
PF: predicated region fallthrough
CT: control target
= control target key end

     0   :  { %vm69_vm0 = vcmask 523264   ;;  %v4048_v34 = vmov 0.0|0.0   ;;  %vm4049_vm1 = vmmov 0   ;;  %v4050_v55 = vmov 0.0   ;;  %s4618_s2 = inlined_call_operand.vmem [shape: f32[64,32], index: 2, kind: input, shape index: {}]   ;;  %s4619_s1 = inlined_call_operand.vmem [shape: f32[64,32], index: 1, kind: input, shape index: {}]   ;;  %s4620_s0 = inlined_call_operand.vmem [shape: f32[80,64], index: 0, kind: input, shape index: {}]   ;;  %s4621_s3 = inlined_call_operand.vmem [shape: f32[64,32], index: 3, kind: input, shape index: {}]   ;;  %s4622_s4 = inlined_call_operand.vmem [shape: f32[32,32], index: 4, kind: input, shape index: {}]   ;;  %s4623_s5 = inlined_call_operand.vmem [shape: f32[32,32], index: 5, kind: input, shape index: {}]   ;;  %s4624_s6 = inlined_call_operand.vmem [shape: f32[32,32], index: 6, kind: input, shape index: {}]   ;;  %s4625_s8 = inlined_call_operand.vmem [shape: f32[1,32], index: 8, kind: input, shape index: {}]   ;;  %s4626_s7 = inlined_call_operand.vmem [shape: f32[1,32], index: 7, kind: input, shape index: {}]   ;;  %s4627_s9 = inlined_call_operand.vmem [shape: f32[1,32], index: 9, kind: input, shape index: {}]   ;;  %s4628_s10 = inlined_call_operand.vmem [shape: f32[1,32], index: 10, kind: input, shape index: {}]   ;;  %s4629_s11 = inlined_call_operand.vmem [shape: f32[32,2], index: 11, kind: input, shape index: {}]   ;;  %s4630_s12 = inlined_call_operand.vmem [shape: f32[1,2], index: 12, kind: input, shape index: {}]   ;;  %s4631_s13 = inlined_call_operand.vmem [shape: f32[8,2], index: 13, kind: output, shape index: {}]  }
   0x1   :  { %v226_v0 = vld [vmem:[%s4618_s2] sm:$0xff]  ;;  %v227_v1 = vld [vmem:[%s4618_s2 + $0x8] sm:$0xff]  ;;  %v228_v2 = vld [vmem:[%s4618_s2 + $0x10] sm:$0xff]  ;;  %vm215_vm2 = vcmask 261120   ;;  %vm2979_vm3 = vcmask 15360  }
   0x2   :  { %v3727_v3 = vpack.c.bf16 %v227_v1, %v226_v0  ;;  %v229_v4 = vld [vmem:[%s4618_s2 + $0x18] sm:$0xff]  ;;  %v230_v5 = vld [vmem:[%s4618_s2 + $0x20] sm:$0xff]  ;;  %v231_v7 = vld [vmem:[%s4618_s2 + $0x28] sm:$0xff] }
   0x3   :  { %v3731_v6 = vpack.c.bf16 %v229_v4, %v228_v2  ;;  %v54_v8 = vld [vmem:[%s4619_s1] sm:$0xff]  ;;  %v55_v9 = vld [vmem:[%s4619_s1 + $0x8] sm:$0xff]  ;;  %v56_v11 = vld [vmem:[%s4619_s1 + $0x10] sm:$0xff]  ;;  %v3735_v16 = vpack.c.bf16 %v231_v7, %v230_v5 }
   0x4   :  { %3728 = vmatprep.subr.bf16.mxu1 %v3727_v3  ;;  %v3711_v10 = vpack.c.bf16 %v55_v9, %v54_v8  ;;  %v57_v12 = vld [vmem:[%s4619_s1 + $0x18] sm:$0xff]  ;;  %v4154_v14 = vld [vmem:[%s4620_s0] sm:$0xff]  ;;  %v59_v17 = vld [vmem:[%s4619_s1 + $0x28] sm:$0xff] }
   0x5   :  { %3730 = vmatpush3.bf16.msra.mxu1 %v3727_v3  ;;  %v3715_v13 = vpack.c.bf16 %v57_v12, %v56_v11  ;;  %v58_v15 = vld [vmem:[%s4619_s1 + $0x20] sm:$0xff]  ;;  %v232_v18 = vld [vmem:[%s4618_s2 + $0x30] sm:$0xff]  ;;  %v233_v19 = vld [vmem:[%s4618_s2 + $0x38] sm:$0xff]  ;;  %3324 = vmatprep.mubr.msk.f32.mxu1 %vm69_vm0, %v4154_v14 }
   0x6   :  { %3732 = vmatprep.subr.bf16.mxu1 %v3731_v6  ;;  %3712 = vmatprep.subr.bf16.mxu0 %v3711_v10  ;;  %v3719_v20 = vpack.c.bf16 %v59_v17, %v58_v15  ;;  %v60_v21 = vld [vmem:[%s4619_s1 + $0x30] sm:$0xff]  ;;  %v61_v22 = vld [vmem:[%s4619_s1 + $0x38] sm:$0xff]  ;;  %v3739_v23 = vpack.c.bf16 %v233_v19, %v232_v18  ;;  %v366_v25 = vld [vmem:[%s4621_s3] sm:$0xff] }
   0x7   :  { %3714 = vmatpush3.bf16.msra.mxu0 %v3711_v10  ;;  %3293 = vmatprep.mubr.msk.f32.mxu0 %vm69_vm0, %v4154_v14  ;;  %v3723_v24 = vpack.c.bf16 %v61_v22, %v60_v21  ;;  %v367_v26 = vld [vmem:[%s4621_s3 + $0x8] sm:$0xff]  ;;  %v506_v27 = vld [vmem:[%s4622_s4] sm:$0xff]  ;;  %v368_v32 = vld [vmem:[%s4621_s3 + $0x10] sm:$0xff] }
   0x8   :  { %3716 = vmatprep.subr.bf16.mxu0 %v3715_v13  ;;  %v507_v28 = vld [vmem:[%s4622_s4 + $0x8] sm:$0xff]  ;;  %v3743_v29 = vpack.c.bf16 %v367_v26, %v366_v25  ;;  %v369_v33 = vld [vmem:[%s4621_s3 + $0x18] sm:$0xff]  ;;  %v4207_v35 = vld [vmem:[%s4620_s0 + $0x10] sm:$0xff] }
   0x9   :  { %3734 = vmatpush3.bf16.msra.mxu1 %v3731_v6  ;;  %v4193_v30 = vld [vmem:[%s4620_s0 + $0x8] sm:$0xff]  ;;  %v4195_v31 = vpack.c.bf16 %v507_v28, %v506_v27  ;;  %v508_v36 = vld [vmem:[%s4622_s4 + $0x10] sm:$0xff]  ;;  %v509_v37 = vld [vmem:[%s4622_s4 + $0x18] sm:$0xff]  ;;  %v3747_v38 = vpack.c.bf16 %v369_v33, %v368_v32 }
   0xa   :  { %3736 = vmatprep.subr.bf16.mxu1 %v3735_v16  ;;  %v4223_v39 = vld [vmem:[%s4620_s0 + $0x18] sm:$0xff]  ;;  %v4225_v40 = vpack.c.bf16 %v509_v37, %v508_v36  ;;  %v370_v41 = vld [vmem:[%s4621_s3 + $0x20] sm:$0xff]  ;;  %v371_v42 = vld [vmem:[%s4621_s3 + $0x28] sm:$0xff] }
   0xb   :  { %3718 = vmatpush3.bf16.msra.mxu0 %v3715_v13  ;;  %v4236_v43 = vld [vmem:[%s4620_s0 + $0x20] sm:$0xff]  ;;  %v3751_v44 = vpack.c.bf16 %v371_v42, %v370_v41  ;;  %v4250_v45 = vld [vmem:[%s4620_s0 + $0x28] sm:$0xff]  ;;  %v372_v46 = vld [vmem:[%s4621_s3 + $0x30] sm:$0xff] }
   0xc   :  { %3720 = vmatprep.subr.bf16.mxu0 %v3719_v20  ;;  %v373_v47 = vld [vmem:[%s4621_s3 + $0x38] sm:$0xff]  ;;  %v50_v48 = vld [vmem:[%s4620_s0 + $0x30] sm:$0xff]  ;;  %v52_v51 = vld [vmem:[%s4620_s0 + $0x40] sm:$0xff] }
   0xd   :  { %3738 = vmatpush3.bf16.msra.mxu1 %v3735_v16  ;;  %v3755_v49 = vpack.c.bf16 %v373_v47, %v372_v46  ;;  %v51_v50 = vld [vmem:[%s4620_s0 + $0x38] sm:$0xff]  ;;  %v53_v52 = vld [vmem:[%s4620_s0 + $0x48] sm:$0xff]  ;;  %v510_v53 = vld [vmem:[%s4623_s5] sm:$0xff] }
   0xe   :  { %3740 = vmatprep.subr.bf16.mxu1 %v3739_v23  ;;  %v511_v54 = vld [vmem:[%s4623_s5 + $0x8] sm:$0xff]  ;;  %v512_v57 = vld [vmem:[%s4623_s5 + $0x10] sm:$0xff]  ;;  %v513_v58 = vld [vmem:[%s4623_s5 + $0x18] sm:$0xff] }
   0xf   :  { %3722 = vmatpush3.bf16.msra.mxu0 %v3719_v20  ;;  %v4296_v56 = vpack.c.bf16 %v511_v54, %v510_v53  ;;  %v4309_v59 = vpack.c.bf16 %v513_v58, %v512_v57  ;;  %v514_v60 = vld [vmem:[%s4624_s6] sm:$0xff]  ;;  %v515_v61 = vld [vmem:[%s4624_s6 + $0x8] sm:$0xff]  ;;  %v516_v63 = vld [vmem:[%s4624_s6 + $0x10] sm:$0xff] }
  0x10   :  { %3724 = vmatprep.subr.bf16.mxu0 %v3723_v24  ;;  %v4327_v62 = vpack.c.bf16 %v515_v61, %v514_v60  ;;  %v517_v0 = vld [vmem:[%s4624_s6 + $0x18] sm:$0xff]  ;;  %v2996_v2 = vld [vmem:[%s4625_s8] ss:$0 sm:$0xff] }
  0x11   :  { %3742 = vmatpush3.bf16.msra.mxu1 %v3739_v23  ;;  %v4344_v1 = vpack.c.bf16 %v517_v0, %v516_v63  ;;  %v2985_v4 = vld [vmem:[%s4626_s7] ss:$0 sm:$0xff] }
  0x12   :  { %3759 = vmatprep.subr.bf16.mxu1 %v4048_v34 }
  0x13   :  { %3726 = vmatpush3.bf16.msra.mxu0 %v3723_v24 }
  0x14   :  { %3325 = vmatmul.mubr.msk.f32.vlgmr.msra.gmra.mrb[0].mxu1 %vm69_vm0, %v4193_v30  ;;  %3744 = vmatprep.subr.bf16.mxu0 %v3743_v29 }
  0x15   :  { %3761 = vmatpush3.bf16.msra.mxu1 %v4195_v31  ;;  %3327 = vmatprep.mubr.msk.f32.mxu1 %vm69_vm0, %v4207_v35 }
  0x16   :  { %3294 = vmatmul.mubr.msk.f32.vlgmr.msra.gmra.mrb[0].mxu0 %vm69_vm0, %v4193_v30  ;;  %3762 = vmatprep.subr.bf16.mxu1 %v4048_v34 }
  0x17   :  { %3746 = vmatpush3.bf16.msra.mxu0 %v3743_v29  ;;  %3296 = vmatprep.mubr.msk.f32.mxu0 %vm69_vm0, %v4207_v35 }
  0x18   :  { %3328 = vmatmul.mubr.msk.f32.gmra.mrb[2].mxu1 %vm69_vm0, %v4223_v39  ;;  %3748 = vmatprep.subr.bf16.mxu0 %v3747_v38 }
  0x19   :  { %3330 = vmatprep.mubr.msk.f32.mxu1 %vm69_vm0, %v4236_v43  ;;  %3764 = vmatpush3.bf16.msra.mxu1 %v4225_v40 }
  0x1a   :  { %3765 = vmatprep.subr.bf16.mxu1 %v4048_v34  ;;  %3297 = vmatmul.mubr.msk.f32.gmra.mrb[2].mxu0 %vm69_vm0, %v4223_v39 }
  0x1b   :  { %3750 = vmatpush3.bf16.msra.mxu0 %v3747_v38  ;;  %3299 = vmatprep.mubr.msk.f32.mxu0 %vm69_vm0, %v4236_v43 }
  0x1c   :  { %3331 = vmatmul.mubr.msk.f32.gmra.mrb[4].mxu1 %vm69_vm0, %v4250_v45  ;;  %3752 = vmatprep.subr.bf16.mxu0 %v3751_v44 }
  0x1d   :  { %3333 = vmatprep.mubr.msk.f32.mxu1 %vm69_vm0, %v50_v48 }
  0x1e   :  { %3300 = vmatmul.mubr.msk.f32.gmra.mrb[4].mxu0 %vm69_vm0, %v4250_v45 }
  0x1f   :  { %3302 = vmatprep.mubr.msk.f32.mxu0 %vm69_vm0, %v50_v48  ;;  %3754 = vmatpush3.bf16.msra.mxu0 %v3751_v44 }
  0x20   :  { %3334 = vmatmul.mubr.msk.f32.gmra.mrb[6].mxu1 %vm69_vm0, %v51_v50  ;;  %3756 = vmatprep.subr.bf16.mxu0 %v3755_v49 }
  0x21   :  { %3336 = vmatprep.mubr.msk.f32.mxu1 %vm69_vm0, %v52_v51 }
  0x22   :  { %3303 = vmatmul.mubr.msk.f32.gmra.mrb[6].mxu0 %vm69_vm0, %v51_v50 }
  0x23   :  { %3305 = vmatprep.mubr.msk.f32.mxu0 %vm69_vm0, %v52_v51  ;;  %3758 = vmatpush3.bf16.msra.mxu0 %v3755_v49  ;;  %v3007_v49 = vld [vmem:[%s4627_s9] ss:$0 sm:$0xff] }
  0x24   :  { %3337 = vmatmul.mubr.msk.f32.gmra.mrb[8].mxu1 %vm69_vm0, %v53_v52  ;;  %3777 = vmatprep.subr.bf16.mxu0 %v4048_v34 }
  0x25   :  { %3378 = vmatprep.mubr.msk.f32.mxu1 %vm4049_vm1, %v4050_v55 }
  0x26   :  { %3306 = vmatmul.mubr.msk.f32.gmra.mrb[8].mxu0 %vm69_vm0, %v53_v52 }
  0x27   :  { %3355 = vmatprep.mubr.msk.f32.mxu0 %vm69_vm0, %v4154_v14 }
  0x28   :  { %3379 = vmatmul.mubr.f32.vlgmr.msra.gmra.mrb[10].mxu1 %v4050_v55 }
  0x29   :  { %3767 = vmatpush3.bf16.msra.mxu1 %v4296_v56  ;;  %3389 = vmatprep.mubr.msk.f32.mxu1 %vm4049_vm1, %v4050_v55 }
  0x2a   :  { %3768 = vmatprep.subr.bf16.mxu1 %v4048_v34  ;;  %3356 = vmatmul.mubr.msk.f32.vlgmr.msra.gmra.mrb[10].mxu0 %vm69_vm0, %v4193_v30 }
  0x2b   :  { %3779 = vmatpush3.bf16.msra.mxu0 %v4195_v31  ;;  %3358 = vmatprep.mubr.msk.f32.mxu0 %vm69_vm0, %v4207_v35 }
  0x2c   :  { %3780 = vmatprep.subr.bf16.mxu0 %v4048_v34 }
  0x2d   :  { %3770 = vmatpush3.bf16.msra.mxu1 %v4309_v59 }
  0x2e   :  { %3771 = vmatprep.subr.bf16.mxu1 %v4048_v34  ;;  %3359 = vmatmul.mubr.msk.f32.gmra.mrb[12].mxu0 %vm69_vm0, %v4223_v39 }
  0x2f   :  { %3361 = vmatprep.mubr.msk.f32.mxu0 %vm69_vm0, %v4236_v43  ;;  %3782 = vmatpush3.bf16.msra.mxu0 %v4225_v40 }
  0x30   :  { %3390 = vmatmul.mubr.f32.vlgmr.msra.gmra.mrb[12].mxu1 %v4050_v55  ;;  %3789 = vmatprep.subr.bf16.mxu0 %v4048_v34 }
  0x31   :  { %3773 = vmatpush3.bf16.msra.mxu1 %v4327_v62  ;;  %3400 = vmatprep.mubr.msk.f32.mxu1 %vm4049_vm1, %v4050_v55 }
  0x32   :  { %3774 = vmatprep.subr.bf16.mxu1 %v4048_v34  ;;  %3362 = vmatmul.mubr.msk.f32.gmra.mrb[14].mxu0 %vm69_vm0, %v4250_v45 }
  0x33   :  { %3364 = vmatprep.mubr.msk.f32.mxu0 %vm69_vm0, %v50_v48 }
  0x35   :  { %3776 = vmatpush3.bf16.msra.mxu1 %v4344_v1 }
  0x36   :  { %3365 = vmatmul.mubr.msk.f32.gmra.mrb[16].mxu0 %vm69_vm0, %v51_v50  ;;  %3783 = vmatprep.subr.bf16.mxu1 %v4048_v34 }
  0x37   :  { %3367 = vmatprep.mubr.msk.f32.mxu0 %vm69_vm0, %v52_v51 }
  0x38   :  { %3401 = vmatmul.mubr.f32.vlgmr.msra.gmra.mrb[14].mxu1 %v4050_v55 }
  0x39   :  { %3785 = vmatpush3.bf16.msra.mxu1 %v4296_v56  ;;  %3422 = vmatprep.mubr.msk.f32.mxu1 %vm4049_vm1, %v4050_v55 }
  0x3a   :  { %3368 = vmatmul.mubr.msk.f32.gmra.mrb[18].mxu0 %vm69_vm0, %v53_v52  ;;  %3786 = vmatprep.subr.bf16.mxu1 %v4048_v34 }
  0x3b   :  { %3411 = vmatprep.mubr.msk.f32.mxu0 %vm4049_vm1, %v4050_v55 }
  0x3d   :  { %3788 = vmatpush3.bf16.msra.mxu1 %v4309_v59 }
  0x3e   :  { %3795 = vmatprep.subr.bf16.mxu1 %v4048_v34 }
  0xe7   :  { %v3326_v3 = vpop.f32.mrb[0].mxu1 }
  0xe8   :  { %v313_v5 = vadd.f32 %v3326_v3, %v2996_v2  ;;  %v307_v6 = vpop.f32.mrb[1].mxu1 }
  0xe9   :  { %v308_v7 = vadd.f32 %v2996_v2, %v307_v6  ;;  %v3295_v8 = vpop.f32.mrb[0].mxu0 }
  0xea   :  { %357 = vst.msk [vmem:[#allocation3 + $0x8] sm:$0xff] %vm215_vm2, %v313_v5  ;;  %v172_v9 = vadd.f32 %v3295_v8, %v2985_v4  ;;  %v166_v10 = vpop.f32.mrb[1].mxu0 }
  0xeb   :  { %356 = vst.msk [vmem:[#allocation3] sm:$0xff] %vm215_vm2, %v308_v7  ;;  %v3329_v11 = vpop.f32.mrb[2].mxu1  ;;  %v167_v12 = vadd.f32 %v2985_v4, %v166_v10 }
  0xec   :  { %v323_v13 = vadd.f32 %v3329_v11, %v2996_v2  ;;  %v317_v14 = vpop.f32.mrb[3].mxu1  ;;  %217 = vst.msk [vmem:[#allocation2 + $0x8] sm:$0xff] %vm215_vm2, %v172_v9 }
  0xed   :  { %v318_v15 = vadd.f32 %v2996_v2, %v317_v14  ;;  %216 = vst.msk [vmem:[#allocation2] sm:$0xff] %vm215_vm2, %v167_v12  ;;  %v3298_v16 = vpop.f32.mrb[2].mxu0 }
  0xee   :  { %359 = vst.msk [vmem:[#allocation3 + $0x18] sm:$0xff] %vm215_vm2, %v323_v13  ;;  %v182_v17 = vadd.f32 %v3298_v16, %v2985_v4  ;;  %v176_v18 = vpop.f32.mrb[3].mxu0 }
  0xef   :  { %358 = vst.msk [vmem:[#allocation3 + $0x10] sm:$0xff] %vm215_vm2, %v318_v15  ;;  %v3332_v19 = vpop.f32.mrb[4].mxu1  ;;  %v177_v20 = vadd.f32 %v2985_v4, %v176_v18 }
  0xf0   :  { %v333_v21 = vadd.f32 %v3332_v19, %v2996_v2  ;;  %v327_v22 = vpop.f32.mrb[5].mxu1  ;;  %219 = vst.msk [vmem:[#allocation2 + $0x18] sm:$0xff] %vm215_vm2, %v182_v17 }
  0xf1   :  { %v328_v23 = vadd.f32 %v2996_v2, %v327_v22  ;;  %218 = vst.msk [vmem:[#allocation2 + $0x10] sm:$0xff] %vm215_vm2, %v177_v20  ;;  %v3301_v24 = vpop.f32.mrb[4].mxu0 }
  0xf2   :  { %361 = vst.msk [vmem:[#allocation3 + $0x28] sm:$0xff] %vm215_vm2, %v333_v21  ;;  %v192_v25 = vadd.f32 %v3301_v24, %v2985_v4  ;;  %v186_v26 = vpop.f32.mrb[5].mxu0  ;;  %v520_v0 = vld [vmem:[#allocation3] sm:$0xff] }
  0xf3   :  { %360 = vst.msk [vmem:[#allocation3 + $0x20] sm:$0xff] %vm215_vm2, %v328_v23  ;;  %v3335_v27 = vpop.f32.mrb[6].mxu1  ;;  %v187_v28 = vadd.f32 %v2985_v4, %v186_v26  ;;  %v4407_v23 = vld [vmem:[%s4628_s10] ss:$0 sm:$0xff] }
  0xf4   :  { %v343_v29 = vadd.f32 %v3335_v27, %v2996_v2  ;;  %v337_v30 = vpop.f32.mrb[7].mxu1  ;;  %221 = vst.msk [vmem:[#allocation2 + $0x28] sm:$0xff] %vm215_vm2, %v192_v25  ;;  %v519_v43 = vld [vmem:[#allocation2] sm:$0xff] }
  0xf5   :  { %v338_v32 = vadd.f32 %v2996_v2, %v337_v30  ;;  %220 = vst.msk [vmem:[#allocation2 + $0x20] sm:$0xff] %vm215_vm2, %v187_v28  ;;  %v3304_v33 = vpop.f32.mrb[6].mxu0 }
  0xf6   :  { %363 = vst.msk [vmem:[#allocation3 + $0x38] sm:$0xff] %vm215_vm2, %v343_v29  ;;  %v202_v35 = vadd.f32 %v3304_v33, %v2985_v4  ;;  %v196_v36 = vpop.f32.mrb[7].mxu0 }
  0xf7   :  { %362 = vst.msk [vmem:[#allocation3 + $0x30] sm:$0xff] %vm215_vm2, %v338_v32  ;;  %v3338_v37 = vpop.f32.mrb[8].mxu1  ;;  %v197_v38 = vadd.f32 %v2985_v4, %v196_v36 }
  0xf8   :  { %v353_v39 = vadd.f32 %v3338_v37, %v2996_v2  ;;  %v347_v41 = vpop.f32.mrb[9].mxu1  ;;  %223 = vst.msk [vmem:[#allocation2 + $0x38] sm:$0xff] %vm215_vm2, %v202_v35 }
  0xf9   :  { %v348_v42 = vadd.f32 %v2996_v2, %v347_v41  ;;  %222 = vst.msk [vmem:[#allocation2 + $0x30] sm:$0xff] %vm215_vm2, %v197_v38  ;;  %v3307_v44 = vpop.f32.mrb[8].mxu0 }
  0xfa   :  { %365 = vst.msk [vmem:[#allocation3 + $0x48] sm:$0xff] %vm215_vm2, %v353_v39  ;;  %v212_v45 = vadd.f32 %v3307_v44, %v2985_v4  ;;  %v206_v46 = vpop.f32.mrb[9].mxu0  ;;  %v762_v39 = vld [vmem:[#allocation2 + $0x8] sm:$0xff] }
  0xfb   :  { %364 = vst.msk [vmem:[#allocation3 + $0x40] sm:$0xff] %vm215_vm2, %v348_v42  ;;  %v591_v47 = vpop.f32.mrb[10].mxu1  ;;  %v207_v48 = vadd.f32 %v2985_v4, %v206_v46 }
  0xfc   :  { %v595_v50 = vadd.f32 %v591_v47, %v519_v43  ;;  %v3380_v51 = vpop.f32.mrb[11].mxu1  ;;  %225 = vst.msk [vmem:[#allocation2 + $0x48] sm:$0xff] %vm215_vm2, %v212_v45  ;;  %v763_v47 = vld [vmem:[#allocation3 + $0x8] sm:$0xff] }
  0xfd   :  { %224 = vst.msk [vmem:[#allocation2 + $0x40] sm:$0xff] %vm215_vm2, %v207_v48  ;;  %v3357_v52 = vpop.f32.mrb[10].mxu0 }
  0xfe   :  { %v3018_v53 = vmul.f32 -1.442695, %v595_v50  ;;  %v453_v54 = vadd.f32 %v3357_v52, %v3007_v49  ;;  %v447_v57 = vpop.f32.mrb[11].mxu0 }
  0xff   :  { %v448_v58 = vadd.f32 %v3007_v49, %v447_v57 }
 0x100   :  { %3948 = vpow2.f32 %v3018_v53  ;;  %497 = vst.msk [vmem:[#allocation4 + $0x8] sm:$0xff] %vm215_vm2, %v453_v54 }
 0x101   :  { %496 = vst.msk [vmem:[#allocation4] sm:$0xff] %vm215_vm2, %v448_v58  ;;  %v3360_v60 = vpop.f32.mrb[12].mxu0 }
 0x102   :  { %v463_v61 = vadd.f32 %v3360_v60, %v3007_v49  ;;  %v457_v63 = vpop.f32.mrb[13].mxu0 }
 0x103   :  { %v668_v2 = vpop.f32.mrb[12].mxu1  ;;  %v458_v3 = vadd.f32 %v3007_v49, %v457_v63 }
 0x104   :  { %v672_v4 = vadd.f32 %v668_v2, %v520_v0  ;;  %v3391_v5 = vpop.f32.mrb[13].mxu1  ;;  %499 = vst.msk [vmem:[#allocation4 + $0x18] sm:$0xff] %vm215_vm2, %v463_v61 }
 0x105   :  { %498 = vst.msk [vmem:[#allocation4 + $0x10] sm:$0xff] %vm215_vm2, %v458_v3  ;;  %v3363_v6 = vpop.f32.mrb[14].mxu0 }
 0x106   :  { %v3019_v7 = vmul.f32 -1.442695, %v672_v4  ;;  %v473_v8 = vadd.f32 %v3363_v6, %v3007_v49  ;;  %v467_v9 = vpop.f32.mrb[15].mxu0 }
 0x107   :  { %v468_v10 = vadd.f32 %v3007_v49, %v467_v9  ;;  %v764_v63 = vld [vmem:[#allocation4 + $0x8] sm:$0xff] }
 0x108   :  { %3950 = vpow2.f32 %v3019_v7  ;;  %501 = vst.msk [vmem:[#allocation4 + $0x28] sm:$0xff] %vm215_vm2, %v473_v8  ;;  %v521_v28 = vld [vmem:[#allocation4] sm:$0xff]  ;;  %v999_v8 = vld [vmem:[#allocation2 + $0x10] sm:$0xff] }
 0x109   :  { %500 = vst.msk [vmem:[#allocation4 + $0x20] sm:$0xff] %vm215_vm2, %v468_v10  ;;  %v3366_v11 = vpop.f32.mrb[16].mxu0 }
 0x10a   :  { %v3949_v12 = vpop.eup %3948  ;;  %v483_v13 = vadd.f32 %v3366_v11, %v3007_v49  ;;  %v477_v14 = vpop.f32.mrb[17].mxu0 }
 0x10b   :  { %v599_v15 = vadd.f32 1.0, %v3949_v12  ;;  %v751_v16 = vpop.f32.mrb[14].mxu1  ;;  %v478_v17 = vadd.f32 %v3007_v49, %v477_v14 }
 0x10c   :  { %v3402_v18 = vpop.f32.mrb[15].mxu1  ;;  %503 = vst.msk [vmem:[#allocation4 + $0x38] sm:$0xff] %vm215_vm2, %v483_v13  ;;  %v752_v26 = vadd.f32 %v4407_v23, %v751_v16 }
 0x10d   :  { %3952 = vrcp.f32 %v599_v15  ;;  %502 = vst.msk [vmem:[#allocation4 + $0x30] sm:$0xff] %vm215_vm2, %v478_v17  ;;  %v3369_v19 = vpop.f32.mrb[18].mxu0  ;;  %v1000_v15 = vld [vmem:[#allocation3 + $0x10] sm:$0xff] }
 0x10e   :  { %v493_v20 = vadd.f32 %v3369_v19, %v3007_v49  ;;  %v487_v21 = vpop.f32.mrb[19].mxu0 }
 0x10f   :  { %v488_v22 = vadd.f32 %v3007_v49, %v487_v21 }
 0x110   :  { %505 = vst.msk [vmem:[#allocation4 + $0x48] sm:$0xff] %vm215_vm2, %v493_v20 }
 0x111   :  { %504 = vst.msk [vmem:[#allocation4 + $0x40] sm:$0xff] %vm215_vm2, %v488_v22 }
 0x112   :  { %v3951_v24 = vpop.eup %3950 }
 0x113   :  { %v676_v25 = vadd.f32 1.0, %v3951_v24 }
 0x115   :  { %3954 = vrcp.f32 %v676_v25 }
 0x117   :  { %v3953_v27 = vpop.eup %3952 }
 0x118   :  { %v755_v29 = vmul.f32 %v3953_v27, %v752_v26 }
 0x11a   :  { %v756_v30 = vadd.f32 %v755_v29, %v521_v28  ;;  %v1001_v28 = vld [vmem:[#allocation4 + $0x10] sm:$0xff] }
 0x11c   :  { %3956 = vtanh.f32 %v756_v30 }
 0x11f   :  { %v3955_v32 = vpop.eup %3954 }
 0x120   :  { %v758_v33 = vsub.f32 1.0, %v3955_v32  ;;  %v760_v36 = vmul.f32 0.0, %v3955_v32 }
 0x126   :  { %v3957_v35 = vpop.eup %3956 }
 0x127   :  { %v759_v37 = vmul.f32 %v3957_v35, %v758_v33 }
 0x129   :  { %v761_v38 = vadd.f32 %v760_v36, %v759_v37 }
 0x12b   :  { %3412 = vmatmul.mubr.msk.f32.vlgmr.msra.gmra.mrb[20].mxu0 %vm215_vm2, %v761_v38  ;;  %3423 = vmatmul.mubr.msk.f32.vlgmr.msra.gmra.mrb[16].mxu1 %vm215_vm2, %v761_v38 }
 0x12c   :  { %3791 = vmatpush3.bf16.msra.mxu0 %v4327_v62  ;;  %3433 = vmatprep.mubr.msk.f32.mxu0 %vm4049_vm1, %v4050_v55 }
 0x12d   :  { %3792 = vmatprep.subr.bf16.mxu0 %v4048_v34  ;;  %3797 = vmatpush3.bf16.msra.mxu1 %v4195_v31 }
 0x12e   :  { %3798 = vmatprep.subr.bf16.mxu1 %v4048_v34  ;;  %3444 = vmatprep.mubr.msk.f32.mxu1 %vm4049_vm1, %v4050_v55 }
 0x130   :  { %3794 = vmatpush3.bf16.msra.mxu0 %v4344_v1 }
 0x131   :  { %3801 = vmatprep.subr.bf16.mxu0 %v4048_v34  ;;  %3800 = vmatpush3.bf16.msra.mxu1 %v4225_v40 }
 0x132   :  { %3807 = vmatprep.subr.bf16.mxu1 %v4048_v34 }
 0x133   :  { %3434 = vmatmul.mubr.msk.f32.vlgmr.msra.gmra.mrb[22].mxu0 %vm215_vm2, %v761_v38 }
 0x134   :  { %3803 = vmatpush3.bf16.msra.mxu0 %v4296_v56  ;;  %3455 = vmatprep.mubr.msk.f32.mxu0 %vm4049_vm1, %v4050_v55 }
 0x135   :  { %3804 = vmatprep.subr.bf16.mxu0 %v4048_v34 }
 0x138   :  { %3806 = vmatpush3.bf16.msra.mxu0 %v4309_v59 }
 0x139   :  { %3813 = vmatprep.subr.bf16.mxu0 %v4048_v34 }
 0x1fe   :  { %v834_v41 = vpop.f32.mrb[20].mxu0  ;;  %v911_v42 = vpop.f32.mrb[16].mxu1 }
 0x1ff   :  { %v838_v43 = vadd.f32 %v834_v41, %v762_v39  ;;  %v3413_v44 = vpop.f32.mrb[21].mxu0  ;;  %v3424_v45 = vpop.f32.mrb[17].mxu1  ;;  %v915_v48 = vadd.f32 %v911_v42, %v763_v47 }
 0x201   :  { %v3022_v46 = vmul.f32 -1.442695, %v838_v43  ;;  %v3024_v49 = vmul.f32 -1.442695, %v915_v48 }
 0x203   :  { %3958 = vpow2.f32 %v3022_v46  ;;  %v1237_v46 = vld [vmem:[#allocation3 + $0x18] sm:$0xff] }
 0x204   :  { %3960 = vpow2.f32 %v3024_v49 }
 0x206   :  { %v988_v50 = vpop.f32.mrb[22].mxu0 }
 0x207   :  { %v3435_v51 = vpop.f32.mrb[23].mxu0  ;;  %v989_v58 = vadd.f32 %v4407_v23, %v988_v50 }
 0x20d   :  { %v3959_v52 = vpop.eup %3958 }
 0x20e   :  { %v842_v53 = vadd.f32 1.0, %v3959_v52  ;;  %v3961_v54 = vpop.eup %3960 }
 0x20f   :  { %v919_v57 = vadd.f32 1.0, %v3961_v54 }
 0x210   :  { %3962 = vrcp.f32 %v842_v53 }
 0x211   :  { %3964 = vrcp.f32 %v919_v57 }
 0x21a   :  { %v3963_v60 = vpop.eup %3962 }
 0x21b   :  { %v992_v61 = vmul.f32 %v3963_v60, %v989_v58  ;;  %v3965_v2 = vpop.eup %3964 }
 0x21c   :  { %v995_v3 = vsub.f32 1.0, %v3965_v2  ;;  %v997_v6 = vmul.f32 %v3965_v2, %v761_v38  ;;  %v1236_v38 = vld [vmem:[#allocation2 + $0x18] sm:$0xff] }
 0x21d   :  { %v993_v0 = vadd.f32 %v992_v61, %v764_v63  ;;  %v1238_v61 = vld [vmem:[#allocation4 + $0x18] sm:$0xff] }
 0x21f   :  { %3966 = vtanh.f32 %v993_v0 }
 0x229   :  { %v3967_v4 = vpop.eup %3966 }
 0x22a   :  { %v996_v5 = vmul.f32 %v3967_v4, %v995_v3 }
 0x22c   :  { %v998_v7 = vadd.f32 %v997_v6, %v996_v5 }
 0x22e   :  { %3445 = vmatmul.mubr.msk.f32.vlgmr.msra.gmra.mrb[18].mxu1 %vm215_vm2, %v998_v7  ;;  %3456 = vmatmul.mubr.msk.f32.vlgmr.msra.gmra.mrb[24].mxu0 %vm215_vm2, %v998_v7 }
 0x22f   :  { %3809 = vmatpush3.bf16.msra.mxu1 %v4327_v62  ;;  %3466 = vmatprep.mubr.msk.f32.mxu1 %vm4049_vm1, %v4050_v55 }
 0x230   :  { %3810 = vmatprep.subr.bf16.mxu1 %v4048_v34  ;;  %3815 = vmatpush3.bf16.msra.mxu0 %v4195_v31 }
 0x231   :  { %3816 = vmatprep.subr.bf16.mxu0 %v4048_v34  ;;  %3477 = vmatprep.mubr.msk.f32.mxu0 %vm4049_vm1, %v4050_v55 }
 0x233   :  { %3812 = vmatpush3.bf16.msra.mxu1 %v4344_v1 }
 0x234   :  { %3819 = vmatprep.subr.bf16.mxu1 %v4048_v34  ;;  %3818 = vmatpush3.bf16.msra.mxu0 %v4225_v40 }
 0x235   :  { %3825 = vmatprep.subr.bf16.mxu0 %v4048_v34 }
 0x236   :  { %3467 = vmatmul.mubr.msk.f32.vlgmr.msra.gmra.mrb[20].mxu1 %vm215_vm2, %v998_v7 }
 0x237   :  { %3821 = vmatpush3.bf16.msra.mxu1 %v4296_v56  ;;  %3488 = vmatprep.mubr.msk.f32.mxu1 %vm4049_vm1, %v4050_v55 }
 0x238   :  { %3822 = vmatprep.subr.bf16.mxu1 %v4048_v34 }
 0x23b   :  { %3824 = vmatpush3.bf16.msra.mxu1 %v4309_v59 }
 0x23c   :  { %3831 = vmatprep.subr.bf16.mxu1 %v4048_v34 }
 0x301   :  { %v1071_v9 = vpop.f32.mrb[18].mxu1  ;;  %v1148_v10 = vpop.f32.mrb[24].mxu0 }
 0x302   :  { %v1075_v11 = vadd.f32 %v1071_v9, %v999_v8  ;;  %v3446_v12 = vpop.f32.mrb[19].mxu1  ;;  %v3457_v13 = vpop.f32.mrb[25].mxu0  ;;  %v1152_v16 = vadd.f32 %v1148_v10, %v1000_v15 }
 0x304   :  { %v3027_v14 = vmul.f32 -1.442695, %v1075_v11  ;;  %v3029_v17 = vmul.f32 -1.442695, %v1152_v16 }
 0x306   :  { %3968 = vpow2.f32 %v3027_v14  ;;  %v1474_v14 = vld [vmem:[#allocation3 + $0x20] sm:$0xff] }
 0x307   :  { %3970 = vpow2.f32 %v3029_v17 }
 0x309   :  { %v1225_v18 = vpop.f32.mrb[20].mxu1 }
 0x30a   :  { %v3468_v19 = vpop.f32.mrb[21].mxu1  ;;  %v1226_v25 = vadd.f32 %v4407_v23, %v1225_v18 }
 0x310   :  { %v3969_v20 = vpop.eup %3968 }
 0x311   :  { %v1079_v21 = vadd.f32 1.0, %v3969_v20  ;;  %v3971_v22 = vpop.eup %3970 }
 0x312   :  { %v1156_v24 = vadd.f32 1.0, %v3971_v22 }
 0x313   :  { %3972 = vrcp.f32 %v1079_v21 }
 0x314   :  { %3974 = vrcp.f32 %v1156_v24 }
 0x31d   :  { %v3973_v26 = vpop.eup %3972 }
 0x31e   :  { %v1229_v27 = vmul.f32 %v3973_v26, %v1226_v25  ;;  %v3975_v30 = vpop.eup %3974 }
 0x31f   :  { %v1232_v32 = vsub.f32 1.0, %v3975_v30  ;;  %v1234_v36 = vmul.f32 %v3975_v30, %v998_v7  ;;  %v1473_v7 = vld [vmem:[#allocation2 + $0x20] sm:$0xff] }
 0x320   :  { %v1230_v29 = vadd.f32 %v1229_v27, %v1001_v28  ;;  %v1475_v27 = vld [vmem:[#allocation4 + $0x20] sm:$0xff] }
 0x322   :  { %3976 = vtanh.f32 %v1230_v29 }
 0x32c   :  { %v3977_v33 = vpop.eup %3976 }
 0x32d   :  { %v1233_v35 = vmul.f32 %v3977_v33, %v1232_v32 }
 0x32f   :  { %v1235_v37 = vadd.f32 %v1234_v36, %v1233_v35 }
 0x331   :  { %3478 = vmatmul.mubr.msk.f32.vlgmr.msra.gmra.mrb[26].mxu0 %vm215_vm2, %v1235_v37  ;;  %3489 = vmatmul.mubr.msk.f32.vlgmr.msra.gmra.mrb[22].mxu1 %vm215_vm2, %v1235_v37 }
 0x332   :  { %3827 = vmatpush3.bf16.msra.mxu0 %v4327_v62  ;;  %3499 = vmatprep.mubr.msk.f32.mxu0 %vm4049_vm1, %v4050_v55 }
 0x333   :  { %3828 = vmatprep.subr.bf16.mxu0 %v4048_v34  ;;  %3833 = vmatpush3.bf16.msra.mxu1 %v4195_v31 }
 0x334   :  { %3834 = vmatprep.subr.bf16.mxu1 %v4048_v34  ;;  %3510 = vmatprep.mubr.msk.f32.mxu1 %vm4049_vm1, %v4050_v55 }
 0x336   :  { %3830 = vmatpush3.bf16.msra.mxu0 %v4344_v1 }
 0x337   :  { %3837 = vmatprep.subr.bf16.mxu0 %v4048_v34  ;;  %3836 = vmatpush3.bf16.msra.mxu1 %v4225_v40 }
 0x338   :  { %3843 = vmatprep.subr.bf16.mxu1 %v4048_v34 }
 0x339   :  { %3500 = vmatmul.mubr.msk.f32.vlgmr.msra.gmra.mrb[28].mxu0 %vm215_vm2, %v1235_v37 }
 0x33a   :  { %3839 = vmatpush3.bf16.msra.mxu0 %v4296_v56  ;;  %3521 = vmatprep.mubr.msk.f32.mxu0 %vm4049_vm1, %v4050_v55 }
 0x33b   :  { %3840 = vmatprep.subr.bf16.mxu0 %v4048_v34 }
 0x33e   :  { %3842 = vmatpush3.bf16.msra.mxu0 %v4309_v59 }
 0x33f   :  { %3849 = vmatprep.subr.bf16.mxu0 %v4048_v34 }
 0x404   :  { %v1308_v39 = vpop.f32.mrb[26].mxu0  ;;  %v1385_v41 = vpop.f32.mrb[22].mxu1 }
 0x405   :  { %v1312_v42 = vadd.f32 %v1308_v39, %v1236_v38  ;;  %v3479_v43 = vpop.f32.mrb[27].mxu0  ;;  %v3490_v44 = vpop.f32.mrb[23].mxu1  ;;  %v1389_v47 = vadd.f32 %v1385_v41, %v1237_v46 }
 0x407   :  { %v3032_v45 = vmul.f32 -1.442695, %v1312_v42  ;;  %v3034_v48 = vmul.f32 -1.442695, %v1389_v47 }
 0x409   :  { %3978 = vpow2.f32 %v3032_v45  ;;  %v1711_v45 = vld [vmem:[#allocation3 + $0x28] sm:$0xff] }
 0x40a   :  { %3980 = vpow2.f32 %v3034_v48 }
 0x40c   :  { %v1462_v49 = vpop.f32.mrb[28].mxu0 }
 0x40d   :  { %v3501_v50 = vpop.f32.mrb[29].mxu0  ;;  %v1463_v57 = vadd.f32 %v4407_v23, %v1462_v49 }
 0x413   :  { %v3979_v51 = vpop.eup %3978 }
 0x414   :  { %v1316_v52 = vadd.f32 1.0, %v3979_v51  ;;  %v3981_v53 = vpop.eup %3980 }
 0x415   :  { %v1393_v54 = vadd.f32 1.0, %v3981_v53 }
 0x416   :  { %3982 = vrcp.f32 %v1316_v52 }
 0x417   :  { %3984 = vrcp.f32 %v1393_v54 }
 0x420   :  { %v3983_v58 = vpop.eup %3982 }
 0x421   :  { %v1466_v60 = vmul.f32 %v3983_v58, %v1463_v57  ;;  %v3985_v0 = vpop.eup %3984 }
 0x422   :  { %v1469_v2 = vsub.f32 1.0, %v3985_v0  ;;  %v1471_v5 = vmul.f32 %v3985_v0, %v1235_v37  ;;  %v1710_v37 = vld [vmem:[#allocation2 + $0x28] sm:$0xff] }
 0x423   :  { %v1467_v63 = vadd.f32 %v1466_v60, %v1238_v61  ;;  %v1712_v60 = vld [vmem:[#allocation4 + $0x28] sm:$0xff] }
 0x425   :  { %3986 = vtanh.f32 %v1467_v63 }
 0x42f   :  { %v3987_v3 = vpop.eup %3986 }
 0x430   :  { %v1470_v4 = vmul.f32 %v3987_v3, %v1469_v2 }
 0x432   :  { %v1472_v6 = vadd.f32 %v1471_v5, %v1470_v4 }
 0x434   :  { %3511 = vmatmul.mubr.msk.f32.vlgmr.msra.gmra.mrb[24].mxu1 %vm215_vm2, %v1472_v6  ;;  %3522 = vmatmul.mubr.msk.f32.vlgmr.msra.gmra.mrb[30].mxu0 %vm215_vm2, %v1472_v6 }
 0x435   :  { %3845 = vmatpush3.bf16.msra.mxu1 %v4327_v62  ;;  %3532 = vmatprep.mubr.msk.f32.mxu1 %vm4049_vm1, %v4050_v55 }
 0x436   :  { %3846 = vmatprep.subr.bf16.mxu1 %v4048_v34  ;;  %3851 = vmatpush3.bf16.msra.mxu0 %v4195_v31 }
 0x437   :  { %3852 = vmatprep.subr.bf16.mxu0 %v4048_v34  ;;  %3543 = vmatprep.mubr.msk.f32.mxu0 %vm4049_vm1, %v4050_v55 }
 0x439   :  { %3848 = vmatpush3.bf16.msra.mxu1 %v4344_v1 }
 0x43a   :  { %3855 = vmatprep.subr.bf16.mxu1 %v4048_v34  ;;  %3854 = vmatpush3.bf16.msra.mxu0 %v4225_v40 }
 0x43b   :  { %3861 = vmatprep.subr.bf16.mxu0 %v4048_v34 }
 0x43c   :  { %3533 = vmatmul.mubr.msk.f32.vlgmr.msra.gmra.mrb[26].mxu1 %vm215_vm2, %v1472_v6 }
 0x43d   :  { %3857 = vmatpush3.bf16.msra.mxu1 %v4296_v56  ;;  %3554 = vmatprep.mubr.msk.f32.mxu1 %vm4049_vm1, %v4050_v55 }
 0x43e   :  { %3858 = vmatprep.subr.bf16.mxu1 %v4048_v34 }
 0x441   :  { %3860 = vmatpush3.bf16.msra.mxu1 %v4309_v59 }
 0x442   :  { %3867 = vmatprep.subr.bf16.mxu1 %v4048_v34 }
 0x507   :  { %v1545_v8 = vpop.f32.mrb[24].mxu1  ;;  %v1622_v9 = vpop.f32.mrb[30].mxu0 }
 0x508   :  { %v1549_v10 = vadd.f32 %v1545_v8, %v1473_v7  ;;  %v3512_v11 = vpop.f32.mrb[25].mxu1  ;;  %v3523_v12 = vpop.f32.mrb[31].mxu0  ;;  %v1626_v15 = vadd.f32 %v1622_v9, %v1474_v14 }
 0x50a   :  { %v3037_v13 = vmul.f32 -1.442695, %v1549_v10  ;;  %v3039_v16 = vmul.f32 -1.442695, %v1626_v15 }
 0x50c   :  { %3988 = vpow2.f32 %v3037_v13  ;;  %v1948_v13 = vld [vmem:[#allocation3 + $0x30] sm:$0xff] }
 0x50d   :  { %3990 = vpow2.f32 %v3039_v16 }
 0x50f   :  { %v1699_v17 = vpop.f32.mrb[26].mxu1 }
 0x510   :  { %v3534_v18 = vpop.f32.mrb[27].mxu1  ;;  %v1700_v24 = vadd.f32 %v4407_v23, %v1699_v17 }
 0x516   :  { %v3989_v19 = vpop.eup %3988 }
 0x517   :  { %v1553_v20 = vadd.f32 1.0, %v3989_v19  ;;  %v3991_v21 = vpop.eup %3990 }
 0x518   :  { %v1630_v22 = vadd.f32 1.0, %v3991_v21 }
 0x519   :  { %3992 = vrcp.f32 %v1553_v20 }
 0x51a   :  { %3994 = vrcp.f32 %v1630_v22 }
 0x523   :  { %v3993_v25 = vpop.eup %3992 }
 0x524   :  { %v1703_v26 = vmul.f32 %v3993_v25, %v1700_v24  ;;  %v3995_v29 = vpop.eup %3994 }
 0x525   :  { %v1706_v30 = vsub.f32 1.0, %v3995_v29  ;;  %v1708_v35 = vmul.f32 %v3995_v29, %v1472_v6  ;;  %v1947_v6 = vld [vmem:[#allocation2 + $0x30] sm:$0xff] }
 0x526   :  { %v1704_v28 = vadd.f32 %v1703_v26, %v1475_v27  ;;  %v1949_v26 = vld [vmem:[#allocation4 + $0x30] sm:$0xff] }
 0x528   :  { %3996 = vtanh.f32 %v1704_v28 }
 0x532   :  { %v3997_v32 = vpop.eup %3996 }
 0x533   :  { %v1707_v33 = vmul.f32 %v3997_v32, %v1706_v30 }
 0x535   :  { %v1709_v36 = vadd.f32 %v1708_v35, %v1707_v33 }
 0x537   :  { %3544 = vmatmul.mubr.msk.f32.vlgmr.msra.gmra.mrb[32].mxu0 %vm215_vm2, %v1709_v36  ;;  %3555 = vmatmul.mubr.msk.f32.vlgmr.msra.gmra.mrb[28].mxu1 %vm215_vm2, %v1709_v36 }
 0x538   :  { %3863 = vmatpush3.bf16.msra.mxu0 %v4327_v62  ;;  %3565 = vmatprep.mubr.msk.f32.mxu0 %vm4049_vm1, %v4050_v55 }
 0x539   :  { %3864 = vmatprep.subr.bf16.mxu0 %v4048_v34  ;;  %3869 = vmatpush3.bf16.msra.mxu1 %v4195_v31 }
 0x53a   :  { %3870 = vmatprep.subr.bf16.mxu1 %v4048_v34  ;;  %3576 = vmatprep.mubr.msk.f32.mxu1 %vm4049_vm1, %v4050_v55 }
 0x53c   :  { %3866 = vmatpush3.bf16.msra.mxu0 %v4344_v1 }
 0x53d   :  { %3873 = vmatprep.subr.bf16.mxu0 %v4048_v34  ;;  %3872 = vmatpush3.bf16.msra.mxu1 %v4225_v40 }
 0x53e   :  { %3879 = vmatprep.subr.bf16.mxu1 %v4048_v34 }
 0x53f   :  { %3566 = vmatmul.mubr.msk.f32.vlgmr.msra.gmra.mrb[34].mxu0 %vm215_vm2, %v1709_v36 }
 0x540   :  { %3875 = vmatpush3.bf16.msra.mxu0 %v4296_v56  ;;  %3587 = vmatprep.mubr.msk.f32.mxu0 %vm4049_vm1, %v4050_v55 }
 0x541   :  { %3876 = vmatprep.subr.bf16.mxu0 %v4048_v34 }
 0x544   :  { %3878 = vmatpush3.bf16.msra.mxu0 %v4309_v59 }
 0x545   :  { %3885 = vmatprep.subr.bf16.mxu0 %v4048_v34 }
 0x60a   :  { %v1782_v38 = vpop.f32.mrb[32].mxu0  ;;  %v1859_v39 = vpop.f32.mrb[28].mxu1 }
 0x60b   :  { %v1786_v41 = vadd.f32 %v1782_v38, %v1710_v37  ;;  %v3545_v42 = vpop.f32.mrb[33].mxu0  ;;  %v3556_v43 = vpop.f32.mrb[29].mxu1  ;;  %v1863_v46 = vadd.f32 %v1859_v39, %v1711_v45 }
 0x60d   :  { %v3042_v44 = vmul.f32 -1.442695, %v1786_v41  ;;  %v3044_v47 = vmul.f32 -1.442695, %v1863_v46 }
 0x60f   :  { %3998 = vpow2.f32 %v3042_v44  ;;  %v2185_v44 = vld [vmem:[#allocation3 + $0x38] sm:$0xff] }
 0x610   :  { %4000 = vpow2.f32 %v3044_v47 }
 0x612   :  { %v1936_v48 = vpop.f32.mrb[34].mxu0 }
 0x613   :  { %v3567_v49 = vpop.f32.mrb[35].mxu0  ;;  %v1937_v54 = vadd.f32 %v4407_v23, %v1936_v48 }
 0x619   :  { %v3999_v50 = vpop.eup %3998 }
 0x61a   :  { %v1790_v51 = vadd.f32 1.0, %v3999_v50  ;;  %v4001_v52 = vpop.eup %4000 }
 0x61b   :  { %v1867_v53 = vadd.f32 1.0, %v4001_v52 }
 0x61c   :  { %4002 = vrcp.f32 %v1790_v51 }
 0x61d   :  { %4004 = vrcp.f32 %v1867_v53 }
 0x626   :  { %v4003_v57 = vpop.eup %4002 }
 0x627   :  { %v1940_v58 = vmul.f32 %v4003_v57, %v1937_v54  ;;  %v4005_v63 = vpop.eup %4004 }
 0x628   :  { %v1943_v0 = vsub.f32 1.0, %v4005_v63  ;;  %v1945_v4 = vmul.f32 %v4005_v63, %v1709_v36  ;;  %v2184_v36 = vld [vmem:[#allocation2 + $0x38] sm:$0xff] }
 0x629   :  { %v1941_v61 = vadd.f32 %v1940_v58, %v1712_v60  ;;  %v2186_v58 = vld [vmem:[#allocation4 + $0x38] sm:$0xff] }
 0x62b   :  { %4006 = vtanh.f32 %v1941_v61 }
 0x635   :  { %v4007_v2 = vpop.eup %4006 }
 0x636   :  { %v1944_v3 = vmul.f32 %v4007_v2, %v1943_v0 }
 0x638   :  { %v1946_v5 = vadd.f32 %v1945_v4, %v1944_v3 }
 0x63a   :  { %3577 = vmatmul.mubr.msk.f32.vlgmr.msra.gmra.mrb[30].mxu1 %vm215_vm2, %v1946_v5  ;;  %3588 = vmatmul.mubr.msk.f32.vlgmr.msra.gmra.mrb[36].mxu0 %vm215_vm2, %v1946_v5 }
 0x63b   :  { %3881 = vmatpush3.bf16.msra.mxu1 %v4327_v62  ;;  %3598 = vmatprep.mubr.msk.f32.mxu1 %vm4049_vm1, %v4050_v55 }
 0x63c   :  { %3882 = vmatprep.subr.bf16.mxu1 %v4048_v34  ;;  %3887 = vmatpush3.bf16.msra.mxu0 %v4195_v31 }
 0x63d   :  { %3888 = vmatprep.subr.bf16.mxu0 %v4048_v34  ;;  %3609 = vmatprep.mubr.msk.f32.mxu0 %vm4049_vm1, %v4050_v55 }
 0x63f   :  { %3884 = vmatpush3.bf16.msra.mxu1 %v4344_v1 }
 0x640   :  { %3891 = vmatprep.subr.bf16.mxu1 %v4048_v34  ;;  %3890 = vmatpush3.bf16.msra.mxu0 %v4225_v40 }
 0x641   :  { %3897 = vmatprep.subr.bf16.mxu0 %v4048_v34 }
 0x642   :  { %3599 = vmatmul.mubr.msk.f32.vlgmr.msra.gmra.mrb[32].mxu1 %vm215_vm2, %v1946_v5 }
 0x643   :  { %3893 = vmatpush3.bf16.msra.mxu1 %v4296_v56  ;;  %3620 = vmatprep.mubr.msk.f32.mxu1 %vm4049_vm1, %v4050_v55 }
 0x644   :  { %3894 = vmatprep.subr.bf16.mxu1 %v4048_v34 }
 0x647   :  { %3896 = vmatpush3.bf16.msra.mxu1 %v4309_v59 }
 0x648   :  { %3903 = vmatprep.subr.bf16.mxu1 %v4048_v34 }
 0x70d   :  { %v2019_v7 = vpop.f32.mrb[30].mxu1  ;;  %v2096_v8 = vpop.f32.mrb[36].mxu0 }
 0x70e   :  { %v2023_v9 = vadd.f32 %v2019_v7, %v1947_v6  ;;  %v3578_v10 = vpop.f32.mrb[31].mxu1  ;;  %v3589_v11 = vpop.f32.mrb[37].mxu0  ;;  %v2100_v14 = vadd.f32 %v2096_v8, %v1948_v13 }
 0x70f   :  { %v2422_v10 = vld [vmem:[#allocation3 + $0x40] sm:$0xff] }
 0x710   :  { %v3047_v12 = vmul.f32 -1.442695, %v2023_v9  ;;  %v3049_v15 = vmul.f32 -1.442695, %v2100_v14 }
 0x712   :  { %4008 = vpow2.f32 %v3047_v12 }
 0x713   :  { %4010 = vpow2.f32 %v3049_v15 }
 0x715   :  { %v2173_v16 = vpop.f32.mrb[32].mxu1 }
 0x716   :  { %v3600_v17 = vpop.f32.mrb[33].mxu1  ;;  %v2174_v22 = vadd.f32 %v4407_v23, %v2173_v16 }
 0x71c   :  { %v4009_v18 = vpop.eup %4008 }
 0x71d   :  { %v2027_v19 = vadd.f32 1.0, %v4009_v18  ;;  %v4011_v20 = vpop.eup %4010 }
 0x71e   :  { %v2104_v21 = vadd.f32 1.0, %v4011_v20  ;;  %v2423_v20 = vld [vmem:[#allocation4 + $0x40] sm:$0xff] }
 0x71f   :  { %4012 = vrcp.f32 %v2027_v19 }
 0x720   :  { %4014 = vrcp.f32 %v2104_v21 }
 0x729   :  { %v4013_v24 = vpop.eup %4012 }
 0x72a   :  { %v2177_v25 = vmul.f32 %v4013_v24, %v2174_v22  ;;  %v4015_v28 = vpop.eup %4014 }
 0x72b   :  { %v2180_v29 = vsub.f32 1.0, %v4015_v28  ;;  %v2182_v33 = vmul.f32 %v4015_v28, %v1946_v5 }
 0x72c   :  { %v2178_v27 = vadd.f32 %v2177_v25, %v1949_v26 }
 0x72e   :  { %4016 = vtanh.f32 %v2178_v27 }
 0x738   :  { %v4017_v30 = vpop.eup %4016 }
 0x739   :  { %v2181_v32 = vmul.f32 %v4017_v30, %v2180_v29  ;;  %v2895_v29 = vld [vmem:[%s4629_s11] sm:$0xff]  ;;  %v2897_v30 = vld [vmem:[%s4629_s11 + $0x10] sm:$0xff] }
 0x73b   :  { %v2183_v35 = vadd.f32 %v2182_v33, %v2181_v32  ;;  %v2658_v33 = vld [vmem:[#allocation2 + $0x48] sm:$0xff] }
 0x73d   :  { %3610 = vmatmul.mubr.msk.f32.vlgmr.msra.gmra.mrb[38].mxu0 %vm215_vm2, %v2183_v35  ;;  %3621 = vmatmul.mubr.msk.f32.vlgmr.msra.gmra.mrb[34].mxu1 %vm215_vm2, %v2183_v35 }
 0x73e   :  { %3899 = vmatpush3.bf16.msra.mxu0 %v4327_v62  ;;  %3631 = vmatprep.mubr.msk.f32.mxu0 %vm4049_vm1, %v4050_v55 }
 0x73f   :  { %3900 = vmatprep.subr.bf16.mxu0 %v4048_v34  ;;  %3905 = vmatpush3.bf16.msra.mxu1 %v4195_v31 }
 0x740   :  { %3906 = vmatprep.subr.bf16.mxu1 %v4048_v34  ;;  %3642 = vmatprep.mubr.msk.f32.mxu1 %vm4049_vm1, %v4050_v55 }
 0x742   :  { %3902 = vmatpush3.bf16.msra.mxu0 %v4344_v1 }
 0x743   :  { %3909 = vmatprep.subr.bf16.mxu0 %v4048_v34  ;;  %3908 = vmatpush3.bf16.msra.mxu1 %v4225_v40 }
 0x744   :  { %3915 = vmatprep.subr.bf16.mxu1 %v4048_v34 }
 0x745   :  { %3632 = vmatmul.mubr.msk.f32.vlgmr.msra.gmra.mrb[40].mxu0 %vm215_vm2, %v2183_v35 }
 0x746   :  { %3911 = vmatpush3.bf16.msra.mxu0 %v4296_v56  ;;  %3653 = vmatprep.mubr.msk.f32.mxu0 %vm4049_vm1, %v4050_v55 }
 0x747   :  { %3912 = vmatprep.subr.bf16.mxu0 %v4048_v34 }
 0x74a   :  { %3914 = vmatpush3.bf16.msra.mxu0 %v4309_v59 }
 0x74b   :  { %3921 = vmatprep.subr.bf16.mxu0 %v4048_v34 }
 0x810   :  { %v2256_v37 = vpop.f32.mrb[38].mxu0  ;;  %v2333_v38 = vpop.f32.mrb[34].mxu1 }
 0x811   :  { %v2260_v39 = vadd.f32 %v2256_v37, %v2184_v36  ;;  %v3611_v41 = vpop.f32.mrb[39].mxu0  ;;  %v3622_v42 = vpop.f32.mrb[35].mxu1  ;;  %v2337_v45 = vadd.f32 %v2333_v38, %v2185_v44 }
 0x812   :  { %v2659_v42 = vld [vmem:[#allocation3 + $0x48] sm:$0xff] }
 0x813   :  { %v3052_v43 = vmul.f32 -1.442695, %v2260_v39  ;;  %v3054_v46 = vmul.f32 -1.442695, %v2337_v45 }
 0x815   :  { %4018 = vpow2.f32 %v3052_v43 }
 0x816   :  { %4020 = vpow2.f32 %v3054_v46 }
 0x818   :  { %v2410_v47 = vpop.f32.mrb[40].mxu0 }
 0x819   :  { %v3633_v48 = vpop.f32.mrb[41].mxu0  ;;  %v2411_v53 = vadd.f32 %v4407_v23, %v2410_v47 }
 0x81f   :  { %v4019_v49 = vpop.eup %4018 }
 0x820   :  { %v2264_v50 = vadd.f32 1.0, %v4019_v49  ;;  %v4021_v51 = vpop.eup %4020 }
 0x821   :  { %v2341_v52 = vadd.f32 1.0, %v4021_v51 }
 0x822   :  { %4022 = vrcp.f32 %v2264_v50 }
 0x823   :  { %4024 = vrcp.f32 %v2341_v52 }
 0x82c   :  { %v4023_v54 = vpop.eup %4022 }
 0x82d   :  { %v2414_v57 = vmul.f32 %v4023_v54, %v2411_v53  ;;  %v4025_v61 = vpop.eup %4024  ;;  %v2660_v53 = vld [vmem:[#allocation4 + $0x48] sm:$0xff] }
 0x82e   :  { %v2417_v63 = vsub.f32 1.0, %v4025_v61  ;;  %v2419_v3 = vmul.f32 %v4025_v61, %v2183_v35 }
 0x82f   :  { %v2415_v60 = vadd.f32 %v2414_v57, %v2186_v58 }
 0x831   :  { %4026 = vtanh.f32 %v2415_v60 }
 0x83b   :  { %v4027_v0 = vpop.eup %4026 }
 0x83c   :  { %v2418_v2 = vmul.f32 %v4027_v0, %v2417_v63 }
 0x83e   :  { %v2420_v4 = vadd.f32 %v2419_v3, %v2418_v2  ;;  %v3066_v2 = vld [vmem:[%s4630_s12] ss:$0 sm:$0xff] }
 0x840   :  { %3643 = vmatmul.mubr.msk.f32.vlgmr.msra.gmra.mrb[36].mxu1 %vm215_vm2, %v2420_v4  ;;  %3654 = vmatmul.mubr.msk.f32.vlgmr.msra.gmra.mrb[42].mxu0 %vm215_vm2, %v2420_v4 }
 0x841   :  { %3917 = vmatpush3.bf16.msra.mxu1 %v4327_v62  ;;  %3664 = vmatprep.mubr.msk.f32.mxu1 %vm4049_vm1, %v4050_v55 }
 0x842   :  { %3918 = vmatprep.subr.bf16.mxu1 %v4048_v34  ;;  %3923 = vmatpush3.bf16.msra.mxu0 %v4195_v31  ;;  %v2421_v31 = vld [vmem:[#allocation2 + $0x40] sm:$0xff] }
 0x843   :  { %3924 = vmatprep.subr.bf16.mxu0 %v4048_v34  ;;  %3675 = vmatprep.mubr.msk.f32.mxu0 %vm4049_vm1, %v4050_v55 }
 0x845   :  { %3920 = vmatpush3.bf16.msra.mxu1 %v4344_v1 }
 0x846   :  { %3927 = vmatprep.subr.bf16.mxu1 %v4048_v34  ;;  %3926 = vmatpush3.bf16.msra.mxu0 %v4225_v40 }
 0x847   :  { %3933 = vmatprep.subr.bf16.mxu0 %v4048_v34 }
 0x848   :  { %3665 = vmatmul.mubr.msk.f32.vlgmr.msra.gmra.mrb[38].mxu1 %vm215_vm2, %v2420_v4 }
 0x849   :  { %3929 = vmatpush3.bf16.msra.mxu1 %v4296_v56  ;;  %3686 = vmatprep.mubr.msk.f32.mxu1 %vm4049_vm1, %v4050_v55 }
 0x84a   :  { %3930 = vmatprep.subr.bf16.mxu1 %v4048_v34 }
 0x84d   :  { %3932 = vmatpush3.bf16.msra.mxu1 %v4309_v59 }
 0x84e   :  { %3939 = vmatprep.subr.bf16.mxu1 %v4048_v34 }
 0x913   :  { %v2493_v5 = vpop.f32.mrb[36].mxu1  ;;  %v2570_v6 = vpop.f32.mrb[42].mxu0 }
 0x914   :  { %v2497_v7 = vadd.f32 %v2493_v5, %v2421_v31  ;;  %v3644_v40 = vpop.f32.mrb[37].mxu1  ;;  %v3655_v8 = vpop.f32.mrb[43].mxu0  ;;  %v2574_v11 = vadd.f32 %v2570_v6, %v2422_v10 }
 0x916   :  { %v3057_v9 = vmul.f32 -1.442695, %v2497_v7  ;;  %v3059_v56 = vmul.f32 -1.442695, %v2574_v11 }
 0x918   :  { %4028 = vpow2.f32 %v3057_v9 }
 0x919   :  { %4030 = vpow2.f32 %v3059_v56 }
 0x91b   :  { %v2647_v12 = vpop.f32.mrb[38].mxu1 }
 0x91c   :  { %v3666_v13 = vpop.f32.mrb[39].mxu1  ;;  %v2648_v17 = vadd.f32 %v4407_v23, %v2647_v12 }
 0x922   :  { %v4029_v14 = vpop.eup %4028 }
 0x923   :  { %v2501_v15 = vadd.f32 1.0, %v4029_v14  ;;  %v4031_v59 = vpop.eup %4030 }
 0x924   :  { %v2578_v16 = vadd.f32 1.0, %v4031_v59 }
 0x925   :  { %4032 = vrcp.f32 %v2501_v15 }
 0x926   :  { %4034 = vrcp.f32 %v2578_v16 }
 0x92f   :  { %v4033_v18 = vpop.eup %4032 }
 0x930   :  { %v2651_v19 = vmul.f32 %v4033_v18, %v2648_v17  ;;  %v4035_v22 = vpop.eup %4034 }
 0x931   :  { %v2654_v24 = vsub.f32 1.0, %v4035_v22  ;;  %v2656_v27 = vmul.f32 %v4035_v22, %v2420_v4 }
 0x932   :  { %v2652_v21 = vadd.f32 %v2651_v19, %v2423_v20 }
 0x934   :  { %4036 = vtanh.f32 %v2652_v21 }
 0x93e   :  { %v4037_v25 = vpop.eup %4036 }
 0x93f   :  { %v2655_v26 = vmul.f32 %v4037_v25, %v2654_v24 }
 0x941   :  { %v2657_v28 = vadd.f32 %v2656_v27, %v2655_v26 }
 0x943   :  { %3676 = vmatmul.mubr.msk.f32.vlgmr.msra.gmra.mrb[44].mxu0 %vm215_vm2, %v2657_v28  ;;  %3687 = vmatmul.mubr.msk.f32.vlgmr.msra.gmra.mrb[40].mxu1 %vm215_vm2, %v2657_v28 }
 0x944   :  { %3935 = vmatpush3.bf16.msra.mxu0 %v4327_v62  ;;  %3697 = vmatprep.mubr.msk.f32.mxu0 %vm4049_vm1, %v4050_v55  ;;  %v2896_v62 = vld [vmem:[%s4629_s11 + $0x8] sm:$0xff] }
 0x945   :  { %3936 = vmatprep.subr.bf16.mxu0 %v4048_v34  ;;  %3708 = vmatprep.mubr.msk.f32.mxu1 %vm4049_vm1, %v4050_v55  ;;  %v3940_v32 = vpack.c.bf16 %v2896_v62, %v2895_v29  ;;  %v2898_v55 = vld [vmem:[%s4629_s11 + $0x18] sm:$0xff] }
 0x947   :  { %3941 = vmatpush3.bf16.msra.mxu1 %v3940_v32 }
 0x948   :  { %3938 = vmatpush3.bf16.msra.mxu0 %v4344_v1  ;;  %v3943_v1 = vpack.c.bf16 %v2898_v55, %v2897_v30  ;;  %3942 = vmatprep.subr.bf16.mxu1 %v4048_v34 }
 0x94b   :  { %3698 = vmatmul.mubr.msk.f32.vlgmr.msra.gmra.mrb[46].mxu0 %vm215_vm2, %v2657_v28  ;;  %3944 = vmatpush3.bf16.msra.mxu1 %v3943_v1 }
 0xa16   :  { %v2730_v35 = vpop.f32.mrb[44].mxu0  ;;  %v2807_v36 = vpop.f32.mrb[40].mxu1 }
 0xa17   :  { %v2734_v37 = vadd.f32 %v2730_v35, %v2658_v33  ;;  %v3677_v38 = vpop.f32.mrb[45].mxu0  ;;  %v3688_v39 = vpop.f32.mrb[41].mxu1  ;;  %v2811_v43 = vadd.f32 %v2807_v36, %v2659_v42 }
 0xa19   :  { %v3062_v41 = vmul.f32 -1.442695, %v2734_v37  ;;  %v3064_v44 = vmul.f32 -1.442695, %v2811_v43 }
 0xa1b   :  { %4038 = vpow2.f32 %v3062_v41 }
 0xa1c   :  { %4040 = vpow2.f32 %v3064_v44 }
 0xa1e   :  { %v2884_v45 = vpop.f32.mrb[46].mxu0 }
 0xa1f   :  { %v3699_v46 = vpop.f32.mrb[47].mxu0  ;;  %v2885_v50 = vadd.f32 %v4407_v23, %v2884_v45 }
 0xa25   :  { %v4039_v47 = vpop.eup %4038 }
 0xa26   :  { %v2738_v48 = vadd.f32 1.0, %v4039_v47  ;;  %v4041_v49 = vpop.eup %4040 }
 0xa27   :  { %v2815_v34 = vadd.f32 1.0, %v4041_v49 }
 0xa28   :  { %4042 = vrcp.f32 %v2738_v48 }
 0xa29   :  { %4044 = vrcp.f32 %v2815_v34 }
 0xa32   :  { %v4043_v51 = vpop.eup %4042 }
 0xa33   :  { %v2888_v52 = vmul.f32 %v4043_v51, %v2885_v50  ;;  %v4045_v57 = vpop.eup %4044 }
 0xa34   :  { %v2891_v58 = vsub.f32 1.0, %v4045_v57  ;;  %v2893_v63 = vmul.f32 %v4045_v57, %v2657_v28 }
 0xa35   :  { %v2889_v54 = vadd.f32 %v2888_v52, %v2660_v53 }
 0xa37   :  { %4046 = vtanh.f32 %v2889_v54 }
 0xa41   :  { %v4047_v60 = vpop.eup %4046 }
 0xa42   :  { %v2892_v61 = vmul.f32 %v4047_v60, %v2891_v58 }
 0xa44   :  { %v2894_v0 = vadd.f32 %v2893_v63, %v2892_v61 }
 0xa46   :  { %3709 = vmatmul.mubr.msk.f32.vlgmr.msra.gmra.mrb[42].mxu1 %vm215_vm2, %v2894_v0 }
 0xb19   :  { %v2975_v3 = vpop.f32.mrb[42].mxu1 }
 0xb1a   :  { %v2976_v23 = vadd.f32 %v3066_v2, %v2975_v3  ;;  %v3710_v4 = vpop.f32.mrb[43].mxu1 }
 0xb1c   :  { %2980 = vst.msk [vmem:[%s4631_s13] sm:$0xff] %vm2979_vm3, %v2976_v23 }

</bundles_post_ra>
